<compile_context>
chip_gen: v6e
topology: v6e:2x2x1
jax: 0.10.0
libtpu: 0.0.40
codegen_flags: <defaults>
</compile_context>

<pallas_src>
import math

import jax
import jax.numpy as jnp
from jax import lax
from jax.experimental import pallas as pl
from jax.experimental.pallas import tpu as pltpu


# ------------------------------ weight packing --------------------------------

def _pad8(n):
    return ((n + 7) // 8) * 8


def _slab_layout(D, H, num_layers):
    """Row offsets of each layer's [W_ih^T | W_hh^T | bias] block in the slab."""
    offsets = []
    row = 0
    for l in range(num_layers):
        din = D if l == 0 else H
        off_ih = row
        off_hh = off_ih + _pad8(din)
        off_b = off_hh + _pad8(H)
        row = off_b + 8
        offsets.append((off_ih, din, off_hh, off_b))
    return offsets, row


def prepare_params(params, input_size, hidden_size):
    """Pack all LSTM weights/biases into a single (rows, 4H) f32 slab."""
    D, H = input_size, hidden_size
    offsets, total_rows = _slab_layout(D, H, len(params))
    slab = jnp.zeros((total_rows, 4 * H), jnp.float32)
    for (off_ih, din, off_hh, off_b), (w_ih, w_hh, b_ih, b_hh) in zip(offsets, params):
        slab = slab.at[off_ih:off_ih + din, :].set(jnp.transpose(w_ih))   # (Din,4H)
        slab = slab.at[off_hh:off_hh + H, :].set(jnp.transpose(w_hh))     # (H,4H)
        slab = slab.at[off_b, :].set(b_ih + b_hh)                         # (4H,)
    return slab


# ------------------------------ Pallas kernel --------------------------------

def _make_lstm_attn_kernel(num_layers, S, B, D, H):
    """Fused LSTM + attention + LayerNorm kernel (single invocation, no grid).

    Ref order: x2d (S*B, D), wslab (rows, 4H), ln (2, H) -> ctx (B, H),
               attn (B, S); scratch: o_scr (S*B, H) VMEM.
    """
    offsets, _ = _slab_layout(D, H, num_layers)

    def kernel(x_ref, w_ref, ln_ref, ctx_ref, attn_ref, o_scr):

        def run_layer(xg_all, whh):
            """Recurrence with only h @ W_hh on the serial chain.

            xg_all: (S*B, 4H) precomputed x_t @ W_ih + bias (fp32), row = t*B+b.
            Gate layout matches torch.nn.LSTM: [i, f, g, o] along the 4H axis.
            Per-step outputs are written to o_scr (off the serial chain).
            """
            h = jnp.zeros((B, H), jnp.float32)
            c = jnp.zeros((B, H), jnp.float32)
            for t in range(S):  # static unroll; S is tiny, keeps slices static
                gates = xg_all[t * B:(t + 1) * B, :] + jnp.dot(
                    h, whh, preferred_element_type=jnp.float32)       # (B, 4H)
                sg = jax.nn.sigmoid(gates)      # ONE full-width EUP pass
                i_g = sg[:, 0 * H:1 * H]
                f_g = sg[:, 1 * H:2 * H]
                o_g = sg[:, 3 * H:4 * H]
                g_g = jnp.tanh(gates[:, 2 * H:3 * H])
                c = f_g * c + i_g * g_g
                h = o_g * jnp.tanh(c)
                o_scr[t * B:(t + 1) * B, :] = h                       # stash output
            return h

        # ---- Layer 0: one GEMM for all timesteps' input contribution --------
        off_ih, din, off_hh, off_b = offsets[0]
        wih = w_ref[off_ih:off_ih + din, :]                            # (D, 4H)
        whh = w_ref[off_hh:off_hh + H, :]                              # (H, 4H)
        b = w_ref[off_b:off_b + 1, :]                                  # (1, 4H)
        xg_all = jnp.dot(x_ref[...], wih,
                         preferred_element_type=jnp.float32) + b       # (S*B, 4H)
        h_last = run_layer(xg_all, whh)

        # ---- Deeper layers: one GEMM per layer for the input contribution ---
        for l in range(1, num_layers):
            off_ih, din, off_hh, off_b = offsets[l]
            wih = w_ref[off_ih:off_ih + din, :]
            whh = w_ref[off_hh:off_hh + H, :]
            b = w_ref[off_b:off_b + 1, :]
            o_prev = o_scr[...]                                        # (S*B, H)
            xg_all = jnp.dot(o_prev, wih,
                             preferred_element_type=jnp.float32) + b   # (S*B, 4H)
            h_last = run_layer(xg_all, whh)                            # overwrites o_scr

        # ---- Attention epilogue: query = final hidden state of top layer ----
        # score[b, t] = <o[b, t, :], h_last[b, :]>, softmax over t.
        o_all = o_scr[...]                                             # (S*B, H)
        score_cols = [jnp.sum(o_all[t * B:(t + 1) * B, :] * h_last,
                              axis=-1, keepdims=True)                  # (B, 1)
                      for t in range(S)]
        scores = jnp.concatenate(score_cols, axis=1)                   # (B, S)
        m = jnp.max(scores, axis=-1, keepdims=True)                    # (B, 1)
        e = jnp.exp(scores - m)                                        # one EUP pass
        inv = 1.0 / jnp.sum(e, axis=-1, keepdims=True)                 # (B, 1)
        attn_ref[...] = (e * inv).astype(attn_ref.dtype)               # ONE lane-dense store

        context = jnp.zeros((B, H), jnp.float32)
        for t in range(S):
            w_t = jnp.exp(score_cols[t] - m)                           # (B, 1) tiny, off-chain
            context = context + w_t * o_all[t * B:(t + 1) * B, :]
        context = context * inv                                        # (B, H)

        # ---- LayerNorm over the hidden axis ----------------------------------
        gamma = ln_ref[0:1, :]
        beta = ln_ref[1:2, :]
        mean = jnp.mean(context, axis=-1, keepdims=True)
        var = jnp.mean((context - mean) ** 2, axis=-1, keepdims=True)
        normed = (context - mean) * lax.rsqrt(var + 1e-5)
        ctx_ref[...] = (normed * gamma + beta).astype(ctx_ref.dtype)

    return kernel


# ------------------------------- JAX wrapper ----------------------------------

def lstm_attention_forward(x, wslab, ln, num_layers):
    """x: (B, S, D) batch-first. Returns (normed_context (B,H), attn (B,S))."""
    B, S, D = x.shape
    H = ln.shape[-1]

    # Time-major flatten (row = t*B + b) so the layer-0 input GEMM is one 2D dot.
    x2d = jnp.transpose(x, (1, 0, 2)).reshape(S * B, D)

    kernel = _make_lstm_attn_kernel(num_layers, S, B, D, H)

    vmem = pltpu.MemorySpace.VMEM
    # Single invocation: no grid, everything resident in VMEM (tiny sizes).
    # TODO(synk): for large batches / many tasks, add a leading batch-parallel
    #             grid axis with dimension_semantics=("parallel",) so v7x's
    #             second TensorCore gets independent work.
    ctx, attn = pl.pallas_call(
        kernel,
        out_shape=(jax.ShapeDtypeStruct((B, H), jnp.float32),
                   jax.ShapeDtypeStruct((B, S), jnp.float32)),
        in_specs=[pl.BlockSpec(memory_space=vmem),
                  pl.BlockSpec(memory_space=vmem),
                  pl.BlockSpec(memory_space=vmem)],
        out_specs=(pl.BlockSpec(memory_space=vmem),
                   pl.BlockSpec(memory_space=vmem)),
        scratch_shapes=[pltpu.VMEM((S * B, H), jnp.float32)],
        compiler_params=pltpu.CompilerParams(vmem_limit_bytes=32 * 1024 * 1024),
    )(x2d, wslab, ln)

    return ctx, attn


# ------------------------ deterministic param init ----------------------------

def init_lstm_params(key, input_size, hidden_size, num_layers):
    params = []
    k = 1.0 / math.sqrt(hidden_size)
    for l in range(num_layers):
        in_sz = input_size if l == 0 else hidden_size
        key, k1, k2, k3, k4 = jax.random.split(key, 5)
        w_ih = jax.random.uniform(k1, (4 * hidden_size, in_sz), jnp.float32, -k, k)
        w_hh = jax.random.uniform(k2, (4 * hidden_size, hidden_size), jnp.float32, -k, k)
        b_ih = jax.random.uniform(k3, (4 * hidden_size,), jnp.float32, -k, k)
        b_hh = jax.random.uniform(k4, (4 * hidden_size,), jnp.float32, -k, k)
        params.append((w_ih, w_hh, b_ih, b_hh))
    return params, key


# ----------------------------- pure-JAX reference -----------------------------

def ref_lstm_attention(x, params, gamma, beta):
    B, S, D = x.shape
    inp = x
    h_last = None
    for (w_ih, w_hh, b_ih, b_hh) in params:
        H = w_hh.shape[1]

        def step(carry, x_t):
            h, c = carry
            gates = x_t @ w_ih.T + h @ w_hh.T + b_ih + b_hh
            i, f, g, o = jnp.split(gates, 4, axis=-1)
            i = jax.nn.sigmoid(i); f = jax.nn.sigmoid(f)
            g = jnp.tanh(g); o = jax.nn.sigmoid(o)
            c = f * c + i * g
            h = o * jnp.tanh(c)
            return (h, c), h

        h0 = jnp.zeros((B, H), jnp.float32)
        c0 = jnp.zeros((B, H), jnp.float32)
        (hT, _), outs = lax.scan(step, (h0, c0), jnp.swapaxes(inp, 0, 1))
        inp = jnp.swapaxes(outs, 0, 1)                   # (B, S, H)
        h_last = hT
    o = inp
    score = jnp.einsum('bsh,bh->bs', o, h_last)
    attn = jax.nn.softmax(score, axis=1)
    context = jnp.einsum('bs,bsh->bh', attn, o)
    mean = context.mean(-1, keepdims=True)
    var = ((context - mean) ** 2).mean(-1, keepdims=True)
    normed = (context - mean) / jnp.sqrt(var + 1e-5) * gamma + beta
    return normed, attn


# ------------------------------------ main -------------------------------------

if __name__ == "__main__":
    batch, seq, input_size, hidden_size, num_layers = 2, 8, 16, 32, 2

    key = jax.random.PRNGKey(0)
    key, kx = jax.random.split(key)
    x = jax.random.normal(kx, (batch, seq, input_size), jnp.float32)

    params, key = init_lstm_params(key, input_size, hidden_size, num_layers)
    gamma = jnp.ones((hidden_size,), jnp.float32)        # nn.LayerNorm default weight
    beta = jnp.zeros((hidden_size,), jnp.float32)        # nn.LayerNorm default bias

    wslab = prepare_params(params, input_size, hidden_size)      # packed once
    ln = jnp.concatenate([gamma.reshape(1, -1), beta.reshape(1, -1)], axis=0)

    ctx, attn = lstm_attention_forward(x, wslab, ln, num_layers)
    ctx = jax.block_until_ready(ctx)
    attn = jax.block_until_ready(attn)

    ref_ctx, ref_attn = ref_lstm_attention(x, params, gamma, beta)
    ref_ctx = jax.block_until_ready(ref_ctx)
    ref_attn = jax.block_until_ready(ref_attn)

    assert ctx.shape == (batch, hidden_size), ctx.shape
    assert attn.shape == (batch, seq), attn.shape
    assert jnp.allclose(ctx, ref_ctx, atol=1e-4, rtol=1e-4), \
        f"context max abs err {jnp.max(jnp.abs(ctx - ref_ctx))}"
    assert jnp.allclose(attn, ref_attn, atol=1e-4, rtol=1e-4), \
        f"attn max abs err {jnp.max(jnp.abs(attn - ref_attn))}"

    print("KERNEL_OK")
</pallas_src>

<mosaic_0001>
module attributes {stable_mosaic.version = 11 : i64} {
  func.func @kernel(%arg0: memref<16x16xf32, #tpu.memory_space<vmem>>, %arg1: memref<128x128xf32, #tpu.memory_space<vmem>>, %arg2: memref<2x32xf32, #tpu.memory_space<vmem>>, %arg3: memref<2x32xf32, #tpu.memory_space<vmem>>, %arg4: memref<2x8xf32, #tpu.memory_space<vmem>>, %arg5: memref<16x32xf32, #tpu.memory_space<vmem>>) attributes {dimension_semantics = [], scalar_prefetch = 0 : i64, scratch_operands = 1 : i64, tpu.core_type = #tpu.core_type<tc>} {
    %c0 = arith.constant 0 : index
    %c0_0 = arith.constant 0 : index
    %0 = vector.load %arg1[%c0, %c0_0] : memref<128x128xf32, #tpu.memory_space<vmem>>, vector<16x128xf32>
    %c16 = arith.constant 16 : index
    %c0_1 = arith.constant 0 : index
    %1 = vector.load %arg1[%c16, %c0_1] : memref<128x128xf32, #tpu.memory_space<vmem>>, vector<32x128xf32>
    %c48 = arith.constant 48 : index
    %c0_2 = arith.constant 0 : index
    %2 = vector.load %arg1[%c48, %c0_2] : memref<128x128xf32, #tpu.memory_space<vmem>>, vector<1x128xf32>
    %c0_3 = arith.constant 0 : index
    %c0_4 = arith.constant 0 : index
    %3 = vector.load %arg0[%c0_3, %c0_4] : memref<16x16xf32, #tpu.memory_space<vmem>>, vector<16x16xf32>
    %cst = arith.constant dense<0.000000e+00> : vector<16x128xf32>
    %4 = tpu.matmul %3, %0, %cst {dimension_numbers = #tpu.dot_dimension_numbers<[1], [0], [0], [1], [0, 0, 1, 1], [], []>} : vector<16x16xf32>, vector<16x128xf32>, vector<16x128xf32> -> vector<16x128xf32>
    %5 = vector.broadcast %2 : vector<1x128xf32> to vector<16x128xf32>
    %6 = arith.addf %4, %5 : vector<16x128xf32>
    %cst_5 = arith.constant 0.000000e+00 : f32
    %7 = vector.broadcast %cst_5 : f32 to vector<2x32xf32>
    %cst_6 = arith.constant 0.000000e+00 : f32
    %8 = vector.broadcast %cst_6 : f32 to vector<2x32xf32>
    %9 = vector.extract_strided_slice %6 {offsets = [0, 0], sizes = [2, 128], strides = [1, 1]} : vector<16x128xf32> to vector<2x128xf32>
    %cst_7 = arith.constant dense<0.000000e+00> : vector<2x128xf32>
    %10 = tpu.matmul %7, %1, %cst_7 {dimension_numbers = #tpu.dot_dimension_numbers<[1], [0], [0], [1], [0, 0, 1, 1], [], []>} : vector<2x32xf32>, vector<32x128xf32>, vector<2x128xf32> -> vector<2x128xf32>
    %11 = arith.addf %9, %10 : vector<2x128xf32>
    %12 = arith.negf %11 : vector<2x128xf32>
    %13 = math.exp %12 : vector<2x128xf32>
    %cst_8 = arith.constant 1.000000e+00 : f32
    %14 = vector.broadcast %cst_8 : f32 to vector<2x128xf32>
    %15 = arith.addf %14, %13 : vector<2x128xf32>
    %16 = arith.divf %14, %15 : vector<2x128xf32>
    %17 = vector.extract_strided_slice %16 {offsets = [0, 0], sizes = [2, 32], strides = [1, 1]} : vector<2x128xf32> to vector<2x32xf32>
    %18 = vector.extract_strided_slice %16 {offsets = [0, 32], sizes = [2, 32], strides = [1, 1]} : vector<2x128xf32> to vector<2x32xf32>
    %19 = vector.extract_strided_slice %16 {offsets = [0, 96], sizes = [2, 32], strides = [1, 1]} : vector<2x128xf32> to vector<2x32xf32>
    %20 = vector.extract_strided_slice %11 {offsets = [0, 64], sizes = [2, 32], strides = [1, 1]} : vector<2x128xf32> to vector<2x32xf32>
    %21 = math.tanh %20 : vector<2x32xf32>
    %22 = arith.mulf %18, %8 : vector<2x32xf32>
    %23 = arith.mulf %17, %21 : vector<2x32xf32>
    %24 = arith.addf %22, %23 : vector<2x32xf32>
    %25 = math.tanh %24 : vector<2x32xf32>
    %26 = arith.mulf %19, %25 : vector<2x32xf32>
    %c0_9 = arith.constant 0 : index
    %c0_10 = arith.constant 0 : index
    %27 = vector.load %arg5[%c0_9, %c0_10] : memref<16x32xf32, #tpu.memory_space<vmem>>, vector<2x32xf32>
    tpu.vector_store %arg5[%c0_9, %c0_10], %26 {strides = array<i32>} : memref<16x32xf32, #tpu.memory_space<vmem>>, vector<2x32xf32>,
    %28 = vector.extract_strided_slice %6 {offsets = [2, 0], sizes = [2, 128], strides = [1, 1]} : vector<16x128xf32> to vector<2x128xf32>
    %cst_11 = arith.constant dense<0.000000e+00> : vector<2x128xf32>
    %29 = tpu.matmul %26, %1, %cst_11 {dimension_numbers = #tpu.dot_dimension_numbers<[1], [0], [0], [1], [0, 0, 1, 1], [], []>} : vector<2x32xf32>, vector<32x128xf32>, vector<2x128xf32> -> vector<2x128xf32>
    %30 = arith.addf %28, %29 : vector<2x128xf32>
    %31 = arith.negf %30 : vector<2x128xf32>
    %32 = math.exp %31 : vector<2x128xf32>
    %cst_12 = arith.constant 1.000000e+00 : f32
    %33 = vector.broadcast %cst_12 : f32 to vector<2x128xf32>
    %34 = arith.addf %33, %32 : vector<2x128xf32>
    %35 = arith.divf %33, %34 : vector<2x128xf32>
    %36 = vector.extract_strided_slice %35 {offsets = [0, 0], sizes = [2, 32], strides = [1, 1]} : vector<2x128xf32> to vector<2x32xf32>
    %37 = vector.extract_strided_slice %35 {offsets = [0, 32], sizes = [2, 32], strides = [1, 1]} : vector<2x128xf32> to vector<2x32xf32>
    %38 = vector.extract_strided_slice %35 {offsets = [0, 96], sizes = [2, 32], strides = [1, 1]} : vector<2x128xf32> to vector<2x32xf32>
    %39 = vector.extract_strided_slice %30 {offsets = [0, 64], sizes = [2, 32], strides = [1, 1]} : vector<2x128xf32> to vector<2x32xf32>
    %40 = math.tanh %39 : vector<2x32xf32>
    %41 = arith.mulf %37, %24 : vector<2x32xf32>
    %42 = arith.mulf %36, %40 : vector<2x32xf32>
    %43 = arith.addf %41, %42 : vector<2x32xf32>
    %44 = math.tanh %43 : vector<2x32xf32>
    %45 = arith.mulf %38, %44 : vector<2x32xf32>
    %c2 = arith.constant 2 : index
    %c0_13 = arith.constant 0 : index
    %46 = vector.load %arg5[%c2, %c0_13] : memref<16x32xf32, #tpu.memory_space<vmem>>, vector<2x32xf32>
    tpu.vector_store %arg5[%c2, %c0_13], %45 {strides = array<i32>} : memref<16x32xf32, #tpu.memory_space<vmem>>, vector<2x32xf32>,
    %47 = vector.extract_strided_slice %6 {offsets = [4, 0], sizes = [2, 128], strides = [1, 1]} : vector<16x128xf32> to vector<2x128xf32>
    %cst_14 = arith.constant dense<0.000000e+00> : vector<2x128xf32>
    %48 = tpu.matmul %45, %1, %cst_14 {dimension_numbers = #tpu.dot_dimension_numbers<[1], [0], [0], [1], [0, 0, 1, 1], [], []>} : vector<2x32xf32>, vector<32x128xf32>, vector<2x128xf32> -> vector<2x128xf32>
    %49 = arith.addf %47, %48 : vector<2x128xf32>
    %50 = arith.negf %49 : vector<2x128xf32>
    %51 = math.exp %50 : vector<2x128xf32>
    %cst_15 = arith.constant 1.000000e+00 : f32
    %52 = vector.broadcast %cst_15 : f32 to vector<2x128xf32>
    %53 = arith.addf %52, %51 : vector<2x128xf32>
    %54 = arith.divf %52, %53 : vector<2x128xf32>
    %55 = vector.extract_strided_slice %54 {offsets = [0, 0], sizes = [2, 32], strides = [1, 1]} : vector<2x128xf32> to vector<2x32xf32>
    %56 = vector.extract_strided_slice %54 {offsets = [0, 32], sizes = [2, 32], strides = [1, 1]} : vector<2x128xf32> to vector<2x32xf32>
    %57 = vector.extract_strided_slice %54 {offsets = [0, 96], sizes = [2, 32], strides = [1, 1]} : vector<2x128xf32> to vector<2x32xf32>
    %58 = vector.extract_strided_slice %49 {offsets = [0, 64], sizes = [2, 32], strides = [1, 1]} : vector<2x128xf32> to vector<2x32xf32>
    %59 = math.tanh %58 : vector<2x32xf32>
    %60 = arith.mulf %56, %43 : vector<2x32xf32>
    %61 = arith.mulf %55, %59 : vector<2x32xf32>
    %62 = arith.addf %60, %61 : vector<2x32xf32>
    %63 = math.tanh %62 : vector<2x32xf32>
    %64 = arith.mulf %57, %63 : vector<2x32xf32>
    %c4 = arith.constant 4 : index
    %c0_16 = arith.constant 0 : index
    %65 = vector.load %arg5[%c4, %c0_16] : memref<16x32xf32, #tpu.memory_space<vmem>>, vector<2x32xf32>
    tpu.vector_store %arg5[%c4, %c0_16], %64 {strides = array<i32>} : memref<16x32xf32, #tpu.memory_space<vmem>>, vector<2x32xf32>,
    %66 = vector.extract_strided_slice %6 {offsets = [6, 0], sizes = [2, 128], strides = [1, 1]} : vector<16x128xf32> to vector<2x128xf32>
    %cst_17 = arith.constant dense<0.000000e+00> : vector<2x128xf32>
    %67 = tpu.matmul %64, %1, %cst_17 {dimension_numbers = #tpu.dot_dimension_numbers<[1], [0], [0], [1], [0, 0, 1, 1], [], []>} : vector<2x32xf32>, vector<32x128xf32>, vector<2x128xf32> -> vector<2x128xf32>
    %68 = arith.addf %66, %67 : vector<2x128xf32>
    %69 = arith.negf %68 : vector<2x128xf32>
    %70 = math.exp %69 : vector<2x128xf32>
    %cst_18 = arith.constant 1.000000e+00 : f32
    %71 = vector.broadcast %cst_18 : f32 to vector<2x128xf32>
    %72 = arith.addf %71, %70 : vector<2x128xf32>
    %73 = arith.divf %71, %72 : vector<2x128xf32>
    %74 = vector.extract_strided_slice %73 {offsets = [0, 0], sizes = [2, 32], strides = [1, 1]} : vector<2x128xf32> to vector<2x32xf32>
    %75 = vector.extract_strided_slice %73 {offsets = [0, 32], sizes = [2, 32], strides = [1, 1]} : vector<2x128xf32> to vector<2x32xf32>
    %76 = vector.extract_strided_slice %73 {offsets = [0, 96], sizes = [2, 32], strides = [1, 1]} : vector<2x128xf32> to vector<2x32xf32>
    %77 = vector.extract_strided_slice %68 {offsets = [0, 64], sizes = [2, 32], strides = [1, 1]} : vector<2x128xf32> to vector<2x32xf32>
    %78 = math.tanh %77 : vector<2x32xf32>
    %79 = arith.mulf %75, %62 : vector<2x32xf32>
    %80 = arith.mulf %74, %78 : vector<2x32xf32>
    %81 = arith.addf %79, %80 : vector<2x32xf32>
    %82 = math.tanh %81 : vector<2x32xf32>
    %83 = arith.mulf %76, %82 : vector<2x32xf32>
    %c6 = arith.constant 6 : index
    %c0_19 = arith.constant 0 : index
    %84 = vector.load %arg5[%c6, %c0_19] : memref<16x32xf32, #tpu.memory_space<vmem>>, vector<2x32xf32>
    tpu.vector_store %arg5[%c6, %c0_19], %83 {strides = array<i32>} : memref<16x32xf32, #tpu.memory_space<vmem>>, vector<2x32xf32>,
    %85 = vector.extract_strided_slice %6 {offsets = [8, 0], sizes = [2, 128], strides = [1, 1]} : vector<16x128xf32> to vector<2x128xf32>
    %cst_20 = arith.constant dense<0.000000e+00> : vector<2x128xf32>
    %86 = tpu.matmul %83, %1, %cst_20 {dimension_numbers = #tpu.dot_dimension_numbers<[1], [0], [0], [1], [0, 0, 1, 1], [], []>} : vector<2x32xf32>, vector<32x128xf32>, vector<2x128xf32> -> vector<2x128xf32>
    %87 = arith.addf %85, %86 : vector<2x128xf32>
    %88 = arith.negf %87 : vector<2x128xf32>
    %89 = math.exp %88 : vector<2x128xf32>
    %cst_21 = arith.constant 1.000000e+00 : f32
    %90 = vector.broadcast %cst_21 : f32 to vector<2x128xf32>
    %91 = arith.addf %90, %89 : vector<2x128xf32>
    %92 = arith.divf %90, %91 : vector<2x128xf32>
    %93 = vector.extract_strided_slice %92 {offsets = [0, 0], sizes = [2, 32], strides = [1, 1]} : vector<2x128xf32> to vector<2x32xf32>
    %94 = vector.extract_strided_slice %92 {offsets = [0, 32], sizes = [2, 32], strides = [1, 1]} : vector<2x128xf32> to vector<2x32xf32>
    %95 = vector.extract_strided_slice %92 {offsets = [0, 96], sizes = [2, 32], strides = [1, 1]} : vector<2x128xf32> to vector<2x32xf32>
    %96 = vector.extract_strided_slice %87 {offsets = [0, 64], sizes = [2, 32], strides = [1, 1]} : vector<2x128xf32> to vector<2x32xf32>
    %97 = math.tanh %96 : vector<2x32xf32>
    %98 = arith.mulf %94, %81 : vector<2x32xf32>
    %99 = arith.mulf %93, %97 : vector<2x32xf32>
    %100 = arith.addf %98, %99 : vector<2x32xf32>
    %101 = math.tanh %100 : vector<2x32xf32>
    %102 = arith.mulf %95, %101 : vector<2x32xf32>
    %c8 = arith.constant 8 : index
    %c0_22 = arith.constant 0 : index
    %103 = vector.load %arg5[%c8, %c0_22] : memref<16x32xf32, #tpu.memory_space<vmem>>, vector<2x32xf32>
    tpu.vector_store %arg5[%c8, %c0_22], %102 {strides = array<i32>} : memref<16x32xf32, #tpu.memory_space<vmem>>, vector<2x32xf32>,
    %104 = vector.extract_strided_slice %6 {offsets = [10, 0], sizes = [2, 128], strides = [1, 1]} : vector<16x128xf32> to vector<2x128xf32>
    %cst_23 = arith.constant dense<0.000000e+00> : vector<2x128xf32>
    %105 = tpu.matmul %102, %1, %cst_23 {dimension_numbers = #tpu.dot_dimension_numbers<[1], [0], [0], [1], [0, 0, 1, 1], [], []>} : vector<2x32xf32>, vector<32x128xf32>, vector<2x128xf32> -> vector<2x128xf32>
    %106 = arith.addf %104, %105 : vector<2x128xf32>
    %107 = arith.negf %106 : vector<2x128xf32>
    %108 = math.exp %107 : vector<2x128xf32>
    %cst_24 = arith.constant 1.000000e+00 : f32
    %109 = vector.broadcast %cst_24 : f32 to vector<2x128xf32>
    %110 = arith.addf %109, %108 : vector<2x128xf32>
    %111 = arith.divf %109, %110 : vector<2x128xf32>
    %112 = vector.extract_strided_slice %111 {offsets = [0, 0], sizes = [2, 32], strides = [1, 1]} : vector<2x128xf32> to vector<2x32xf32>
    %113 = vector.extract_strided_slice %111 {offsets = [0, 32], sizes = [2, 32], strides = [1, 1]} : vector<2x128xf32> to vector<2x32xf32>
    %114 = vector.extract_strided_slice %111 {offsets = [0, 96], sizes = [2, 32], strides = [1, 1]} : vector<2x128xf32> to vector<2x32xf32>
    %115 = vector.extract_strided_slice %106 {offsets = [0, 64], sizes = [2, 32], strides = [1, 1]} : vector<2x128xf32> to vector<2x32xf32>
    %116 = math.tanh %115 : vector<2x32xf32>
    %117 = arith.mulf %113, %100 : vector<2x32xf32>
    %118 = arith.mulf %112, %116 : vector<2x32xf32>
    %119 = arith.addf %117, %118 : vector<2x32xf32>
    %120 = math.tanh %119 : vector<2x32xf32>
    %121 = arith.mulf %114, %120 : vector<2x32xf32>
    %c10 = arith.constant 10 : index
    %c0_25 = arith.constant 0 : index
    %122 = vector.load %arg5[%c10, %c0_25] : memref<16x32xf32, #tpu.memory_space<vmem>>, vector<2x32xf32>
    tpu.vector_store %arg5[%c10, %c0_25], %121 {strides = array<i32>} : memref<16x32xf32, #tpu.memory_space<vmem>>, vector<2x32xf32>,
    %123 = vector.extract_strided_slice %6 {offsets = [12, 0], sizes = [2, 128], strides = [1, 1]} : vector<16x128xf32> to vector<2x128xf32>
    %cst_26 = arith.constant dense<0.000000e+00> : vector<2x128xf32>
    %124 = tpu.matmul %121, %1, %cst_26 {dimension_numbers = #tpu.dot_dimension_numbers<[1], [0], [0], [1], [0, 0, 1, 1], [], []>} : vector<2x32xf32>, vector<32x128xf32>, vector<2x128xf32> -> vector<2x128xf32>
    %125 = arith.addf %123, %124 : vector<2x128xf32>
    %126 = arith.negf %125 : vector<2x128xf32>
    %127 = math.exp %126 : vector<2x128xf32>
    %cst_27 = arith.constant 1.000000e+00 : f32
    %128 = vector.broadcast %cst_27 : f32 to vector<2x128xf32>
    %129 = arith.addf %128, %127 : vector<2x128xf32>
    %130 = arith.divf %128, %129 : vector<2x128xf32>
    %131 = vector.extract_strided_slice %130 {offsets = [0, 0], sizes = [2, 32], strides = [1, 1]} : vector<2x128xf32> to vector<2x32xf32>
    %132 = vector.extract_strided_slice %130 {offsets = [0, 32], sizes = [2, 32], strides = [1, 1]} : vector<2x128xf32> to vector<2x32xf32>
    %133 = vector.extract_strided_slice %130 {offsets = [0, 96], sizes = [2, 32], strides = [1, 1]} : vector<2x128xf32> to vector<2x32xf32>
    %134 = vector.extract_strided_slice %125 {offsets = [0, 64], sizes = [2, 32], strides = [1, 1]} : vector<2x128xf32> to vector<2x32xf32>
    %135 = math.tanh %134 : vector<2x32xf32>
    %136 = arith.mulf %132, %119 : vector<2x32xf32>
    %137 = arith.mulf %131, %135 : vector<2x32xf32>
    %138 = arith.addf %136, %137 : vector<2x32xf32>
    %139 = math.tanh %138 : vector<2x32xf32>
    %140 = arith.mulf %133, %139 : vector<2x32xf32>
    %c12 = arith.constant 12 : index
    %c0_28 = arith.constant 0 : index
    %141 = vector.load %arg5[%c12, %c0_28] : memref<16x32xf32, #tpu.memory_space<vmem>>, vector<2x32xf32>
    tpu.vector_store %arg5[%c12, %c0_28], %140 {strides = array<i32>} : memref<16x32xf32, #tpu.memory_space<vmem>>, vector<2x32xf32>,
    %142 = vector.extract_strided_slice %6 {offsets = [14, 0], sizes = [2, 128], strides = [1, 1]} : vector<16x128xf32> to vector<2x128xf32>
    %cst_29 = arith.constant dense<0.000000e+00> : vector<2x128xf32>
    %143 = tpu.matmul %140, %1, %cst_29 {dimension_numbers = #tpu.dot_dimension_numbers<[1], [0], [0], [1], [0, 0, 1, 1], [], []>} : vector<2x32xf32>, vector<32x128xf32>, vector<2x128xf32> -> vector<2x128xf32>
    %144 = arith.addf %142, %143 : vector<2x128xf32>
    %145 = arith.negf %144 : vector<2x128xf32>
    %146 = math.exp %145 : vector<2x128xf32>
    %cst_30 = arith.constant 1.000000e+00 : f32
    %147 = vector.broadcast %cst_30 : f32 to vector<2x128xf32>
    %148 = arith.addf %147, %146 : vector<2x128xf32>
    %149 = arith.divf %147, %148 : vector<2x128xf32>
    %150 = vector.extract_strided_slice %149 {offsets = [0, 0], sizes = [2, 32], strides = [1, 1]} : vector<2x128xf32> to vector<2x32xf32>
    %151 = vector.extract_strided_slice %149 {offsets = [0, 32], sizes = [2, 32], strides = [1, 1]} : vector<2x128xf32> to vector<2x32xf32>
    %152 = vector.extract_strided_slice %149 {offsets = [0, 96], sizes = [2, 32], strides = [1, 1]} : vector<2x128xf32> to vector<2x32xf32>
    %153 = vector.extract_strided_slice %144 {offsets = [0, 64], sizes = [2, 32], strides = [1, 1]} : vector<2x128xf32> to vector<2x32xf32>
    %154 = math.tanh %153 : vector<2x32xf32>
    %155 = arith.mulf %151, %138 : vector<2x32xf32>
    %156 = arith.mulf %150, %154 : vector<2x32xf32>
    %157 = arith.addf %155, %156 : vector<2x32xf32>
    %158 = math.tanh %157 : vector<2x32xf32>
    %159 = arith.mulf %152, %158 : vector<2x32xf32>
    %c14 = arith.constant 14 : index
    %c0_31 = arith.constant 0 : index
    %160 = vector.load %arg5[%c14, %c0_31] : memref<16x32xf32, #tpu.memory_space<vmem>>, vector<2x32xf32>
    tpu.vector_store %arg5[%c14, %c0_31], %159 {strides = array<i32>} : memref<16x32xf32, #tpu.memory_space<vmem>>, vector<2x32xf32>,
    %c56 = arith.constant 56 : index
    %c0_32 = arith.constant 0 : index
    %161 = vector.load %arg1[%c56, %c0_32] : memref<128x128xf32, #tpu.memory_space<vmem>>, vector<32x128xf32>
    %c88 = arith.constant 88 : index
    %c0_33 = arith.constant 0 : index
    %162 = vector.load %arg1[%c88, %c0_33] : memref<128x128xf32, #tpu.memory_space<vmem>>, vector<32x128xf32>
    %c120 = arith.constant 120 : index
    %c0_34 = arith.constant 0 : index
    %163 = vector.load %arg1[%c120, %c0_34] : memref<128x128xf32, #tpu.memory_space<vmem>>, vector<1x128xf32>
    %c0_35 = arith.constant 0 : index
    %c0_36 = arith.constant 0 : index
    %164 = vector.load %arg5[%c0_35, %c0_36] : memref<16x32xf32, #tpu.memory_space<vmem>>, vector<16x32xf32>
    %cst_37 = arith.constant dense<0.000000e+00> : vector<16x128xf32>
    %165 = tpu.matmul %164, %161, %cst_37 {dimension_numbers = #tpu.dot_dimension_numbers<[1], [0], [0], [1], [0, 0, 1, 1], [], []>} : vector<16x32xf32>, vector<32x128xf32>, vector<16x128xf32> -> vector<16x128xf32>
    %166 = vector.broadcast %163 : vector<1x128xf32> to vector<16x128xf32>
    %167 = arith.addf %165, %166 : vector<16x128xf32>
    %cst_38 = arith.constant 0.000000e+00 : f32
    %168 = vector.broadcast %cst_38 : f32 to vector<2x32xf32>
    %cst_39 = arith.constant 0.000000e+00 : f32
    %169 = vector.broadcast %cst_39 : f32 to vector<2x32xf32>
    %170 = vector.extract_strided_slice %167 {offsets = [0, 0], sizes = [2, 128], strides = [1, 1]} : vector<16x128xf32> to vector<2x128xf32>
    %cst_40 = arith.constant dense<0.000000e+00> : vector<2x128xf32>
    %171 = tpu.matmul %168, %162, %cst_40 {dimension_numbers = #tpu.dot_dimension_numbers<[1], [0], [0], [1], [0, 0, 1, 1], [], []>} : vector<2x32xf32>, vector<32x128xf32>, vector<2x128xf32> -> vector<2x128xf32>
    %172 = arith.addf %170, %171 : vector<2x128xf32>
    %173 = arith.negf %172 : vector<2x128xf32>
    %174 = math.exp %173 : vector<2x128xf32>
    %cst_41 = arith.constant 1.000000e+00 : f32
    %175 = vector.broadcast %cst_41 : f32 to vector<2x128xf32>
    %176 = arith.addf %175, %174 : vector<2x128xf32>
    %177 = arith.divf %175, %176 : vector<2x128xf32>
    %178 = vector.extract_strided_slice %177 {offsets = [0, 0], sizes = [2, 32], strides = [1, 1]} : vector<2x128xf32> to vector<2x32xf32>
    %179 = vector.extract_strided_slice %177 {offsets = [0, 32], sizes = [2, 32], strides = [1, 1]} : vector<2x128xf32> to vector<2x32xf32>
    %180 = vector.extract_strided_slice %177 {offsets = [0, 96], sizes = [2, 32], strides = [1, 1]} : vector<2x128xf32> to vector<2x32xf32>
    %181 = vector.extract_strided_slice %172 {offsets = [0, 64], sizes = [2, 32], strides = [1, 1]} : vector<2x128xf32> to vector<2x32xf32>
    %182 = math.tanh %181 : vector<2x32xf32>
    %183 = arith.mulf %179, %169 : vector<2x32xf32>
    %184 = arith.mulf %178, %182 : vector<2x32xf32>
    %185 = arith.addf %183, %184 : vector<2x32xf32>
    %186 = math.tanh %185 : vector<2x32xf32>
    %187 = arith.mulf %180, %186 : vector<2x32xf32>
    %c0_42 = arith.constant 0 : index
    %c0_43 = arith.constant 0 : index
    %188 = vector.load %arg5[%c0_42, %c0_43] : memref<16x32xf32, #tpu.memory_space<vmem>>, vector<2x32xf32>
    tpu.vector_store %arg5[%c0_42, %c0_43], %187 {strides = array<i32>} : memref<16x32xf32, #tpu.memory_space<vmem>>, vector<2x32xf32>,
    %189 = vector.extract_strided_slice %167 {offsets = [2, 0], sizes = [2, 128], strides = [1, 1]} : vector<16x128xf32> to vector<2x128xf32>
    %cst_44 = arith.constant dense<0.000000e+00> : vector<2x128xf32>
    %190 = tpu.matmul %187, %162, %cst_44 {dimension_numbers = #tpu.dot_dimension_numbers<[1], [0], [0], [1], [0, 0, 1, 1], [], []>} : vector<2x32xf32>, vector<32x128xf32>, vector<2x128xf32> -> vector<2x128xf32>
    %191 = arith.addf %189, %190 : vector<2x128xf32>
    %192 = arith.negf %191 : vector<2x128xf32>
    %193 = math.exp %192 : vector<2x128xf32>
    %cst_45 = arith.constant 1.000000e+00 : f32
    %194 = vector.broadcast %cst_45 : f32 to vector<2x128xf32>
    %195 = arith.addf %194, %193 : vector<2x128xf32>
    %196 = arith.divf %194, %195 : vector<2x128xf32>
    %197 = vector.extract_strided_slice %196 {offsets = [0, 0], sizes = [2, 32], strides = [1, 1]} : vector<2x128xf32> to vector<2x32xf32>
    %198 = vector.extract_strided_slice %196 {offsets = [0, 32], sizes = [2, 32], strides = [1, 1]} : vector<2x128xf32> to vector<2x32xf32>
    %199 = vector.extract_strided_slice %196 {offsets = [0, 96], sizes = [2, 32], strides = [1, 1]} : vector<2x128xf32> to vector<2x32xf32>
    %200 = vector.extract_strided_slice %191 {offsets = [0, 64], sizes = [2, 32], strides = [1, 1]} : vector<2x128xf32> to vector<2x32xf32>
    %201 = math.tanh %200 : vector<2x32xf32>
    %202 = arith.mulf %198, %185 : vector<2x32xf32>
    %203 = arith.mulf %197, %201 : vector<2x32xf32>
    %204 = arith.addf %202, %203 : vector<2x32xf32>
    %205 = math.tanh %204 : vector<2x32xf32>
    %206 = arith.mulf %199, %205 : vector<2x32xf32>
    %c2_46 = arith.constant 2 : index
    %c0_47 = arith.constant 0 : index
    %207 = vector.load %arg5[%c2_46, %c0_47] : memref<16x32xf32, #tpu.memory_space<vmem>>, vector<2x32xf32>
    tpu.vector_store %arg5[%c2_46, %c0_47], %206 {strides = array<i32>} : memref<16x32xf32, #tpu.memory_space<vmem>>, vector<2x32xf32>,
    %208 = vector.extract_strided_slice %167 {offsets = [4, 0], sizes = [2, 128], strides = [1, 1]} : vector<16x128xf32> to vector<2x128xf32>
    %cst_48 = arith.constant dense<0.000000e+00> : vector<2x128xf32>
    %209 = tpu.matmul %206, %162, %cst_48 {dimension_numbers = #tpu.dot_dimension_numbers<[1], [0], [0], [1], [0, 0, 1, 1], [], []>} : vector<2x32xf32>, vector<32x128xf32>, vector<2x128xf32> -> vector<2x128xf32>
    %210 = arith.addf %208, %209 : vector<2x128xf32>
    %211 = arith.negf %210 : vector<2x128xf32>
    %212 = math.exp %211 : vector<2x128xf32>
    %cst_49 = arith.constant 1.000000e+00 : f32
    %213 = vector.broadcast %cst_49 : f32 to vector<2x128xf32>
    %214 = arith.addf %213, %212 : vector<2x128xf32>
    %215 = arith.divf %213, %214 : vector<2x128xf32>
    %216 = vector.extract_strided_slice %215 {offsets = [0, 0], sizes = [2, 32], strides = [1, 1]} : vector<2x128xf32> to vector<2x32xf32>
    %217 = vector.extract_strided_slice %215 {offsets = [0, 32], sizes = [2, 32], strides = [1, 1]} : vector<2x128xf32> to vector<2x32xf32>
    %218 = vector.extract_strided_slice %215 {offsets = [0, 96], sizes = [2, 32], strides = [1, 1]} : vector<2x128xf32> to vector<2x32xf32>
    %219 = vector.extract_strided_slice %210 {offsets = [0, 64], sizes = [2, 32], strides = [1, 1]} : vector<2x128xf32> to vector<2x32xf32>
    %220 = math.tanh %219 : vector<2x32xf32>
    %221 = arith.mulf %217, %204 : vector<2x32xf32>
    %222 = arith.mulf %216, %220 : vector<2x32xf32>
    %223 = arith.addf %221, %222 : vector<2x32xf32>
    %224 = math.tanh %223 : vector<2x32xf32>
    %225 = arith.mulf %218, %224 : vector<2x32xf32>
    %c4_50 = arith.constant 4 : index
    %c0_51 = arith.constant 0 : index
    %226 = vector.load %arg5[%c4_50, %c0_51] : memref<16x32xf32, #tpu.memory_space<vmem>>, vector<2x32xf32>
    tpu.vector_store %arg5[%c4_50, %c0_51], %225 {strides = array<i32>} : memref<16x32xf32, #tpu.memory_space<vmem>>, vector<2x32xf32>,
    %227 = vector.extract_strided_slice %167 {offsets = [6, 0], sizes = [2, 128], strides = [1, 1]} : vector<16x128xf32> to vector<2x128xf32>
    %cst_52 = arith.constant dense<0.000000e+00> : vector<2x128xf32>
    %228 = tpu.matmul %225, %162, %cst_52 {dimension_numbers = #tpu.dot_dimension_numbers<[1], [0], [0], [1], [0, 0, 1, 1], [], []>} : vector<2x32xf32>, vector<32x128xf32>, vector<2x128xf32> -> vector<2x128xf32>
    %229 = arith.addf %227, %228 : vector<2x128xf32>
    %230 = arith.negf %229 : vector<2x128xf32>
    %231 = math.exp %230 : vector<2x128xf32>
    %cst_53 = arith.constant 1.000000e+00 : f32
    %232 = vector.broadcast %cst_53 : f32 to vector<2x128xf32>
    %233 = arith.addf %232, %231 : vector<2x128xf32>
    %234 = arith.divf %232, %233 : vector<2x128xf32>
    %235 = vector.extract_strided_slice %234 {offsets = [0, 0], sizes = [2, 32], strides = [1, 1]} : vector<2x128xf32> to vector<2x32xf32>
    %236 = vector.extract_strided_slice %234 {offsets = [0, 32], sizes = [2, 32], strides = [1, 1]} : vector<2x128xf32> to vector<2x32xf32>
    %237 = vector.extract_strided_slice %234 {offsets = [0, 96], sizes = [2, 32], strides = [1, 1]} : vector<2x128xf32> to vector<2x32xf32>
    %238 = vector.extract_strided_slice %229 {offsets = [0, 64], sizes = [2, 32], strides = [1, 1]} : vector<2x128xf32> to vector<2x32xf32>
    %239 = math.tanh %238 : vector<2x32xf32>
    %240 = arith.mulf %236, %223 : vector<2x32xf32>
    %241 = arith.mulf %235, %239 : vector<2x32xf32>
    %242 = arith.addf %240, %241 : vector<2x32xf32>
    %243 = math.tanh %242 : vector<2x32xf32>
    %244 = arith.mulf %237, %243 : vector<2x32xf32>
    %c6_54 = arith.constant 6 : index
    %c0_55 = arith.constant 0 : index
    %245 = vector.load %arg5[%c6_54, %c0_55] : memref<16x32xf32, #tpu.memory_space<vmem>>, vector<2x32xf32>
    tpu.vector_store %arg5[%c6_54, %c0_55], %244 {strides = array<i32>} : memref<16x32xf32, #tpu.memory_space<vmem>>, vector<2x32xf32>,
    %246 = vector.extract_strided_slice %167 {offsets = [8, 0], sizes = [2, 128], strides = [1, 1]} : vector<16x128xf32> to vector<2x128xf32>
    %cst_56 = arith.constant dense<0.000000e+00> : vector<2x128xf32>
    %247 = tpu.matmul %244, %162, %cst_56 {dimension_numbers = #tpu.dot_dimension_numbers<[1], [0], [0], [1], [0, 0, 1, 1], [], []>} : vector<2x32xf32>, vector<32x128xf32>, vector<2x128xf32> -> vector<2x128xf32>
    %248 = arith.addf %246, %247 : vector<2x128xf32>
    %249 = arith.negf %248 : vector<2x128xf32>
    %250 = math.exp %249 : vector<2x128xf32>
    %cst_57 = arith.constant 1.000000e+00 : f32
    %251 = vector.broadcast %cst_57 : f32 to vector<2x128xf32>
    %252 = arith.addf %251, %250 : vector<2x128xf32>
    %253 = arith.divf %251, %252 : vector<2x128xf32>
    %254 = vector.extract_strided_slice %253 {offsets = [0, 0], sizes = [2, 32], strides = [1, 1]} : vector<2x128xf32> to vector<2x32xf32>
    %255 = vector.extract_strided_slice %253 {offsets = [0, 32], sizes = [2, 32], strides = [1, 1]} : vector<2x128xf32> to vector<2x32xf32>
    %256 = vector.extract_strided_slice %253 {offsets = [0, 96], sizes = [2, 32], strides = [1, 1]} : vector<2x128xf32> to vector<2x32xf32>
    %257 = vector.extract_strided_slice %248 {offsets = [0, 64], sizes = [2, 32], strides = [1, 1]} : vector<2x128xf32> to vector<2x32xf32>
    %258 = math.tanh %257 : vector<2x32xf32>
    %259 = arith.mulf %255, %242 : vector<2x32xf32>
    %260 = arith.mulf %254, %258 : vector<2x32xf32>
    %261 = arith.addf %259, %260 : vector<2x32xf32>
    %262 = math.tanh %261 : vector<2x32xf32>
    %263 = arith.mulf %256, %262 : vector<2x32xf32>
    %c8_58 = arith.constant 8 : index
    %c0_59 = arith.constant 0 : index
    %264 = vector.load %arg5[%c8_58, %c0_59] : memref<16x32xf32, #tpu.memory_space<vmem>>, vector<2x32xf32>
    tpu.vector_store %arg5[%c8_58, %c0_59], %263 {strides = array<i32>} : memref<16x32xf32, #tpu.memory_space<vmem>>, vector<2x32xf32>,
    %265 = vector.extract_strided_slice %167 {offsets = [10, 0], sizes = [2, 128], strides = [1, 1]} : vector<16x128xf32> to vector<2x128xf32>
    %cst_60 = arith.constant dense<0.000000e+00> : vector<2x128xf32>
    %266 = tpu.matmul %263, %162, %cst_60 {dimension_numbers = #tpu.dot_dimension_numbers<[1], [0], [0], [1], [0, 0, 1, 1], [], []>} : vector<2x32xf32>, vector<32x128xf32>, vector<2x128xf32> -> vector<2x128xf32>
    %267 = arith.addf %265, %266 : vector<2x128xf32>
    %268 = arith.negf %267 : vector<2x128xf32>
    %269 = math.exp %268 : vector<2x128xf32>
    %cst_61 = arith.constant 1.000000e+00 : f32
    %270 = vector.broadcast %cst_61 : f32 to vector<2x128xf32>
    %271 = arith.addf %270, %269 : vector<2x128xf32>
    %272 = arith.divf %270, %271 : vector<2x128xf32>
    %273 = vector.extract_strided_slice %272 {offsets = [0, 0], sizes = [2, 32], strides = [1, 1]} : vector<2x128xf32> to vector<2x32xf32>
    %274 = vector.extract_strided_slice %272 {offsets = [0, 32], sizes = [2, 32], strides = [1, 1]} : vector<2x128xf32> to vector<2x32xf32>
    %275 = vector.extract_strided_slice %272 {offsets = [0, 96], sizes = [2, 32], strides = [1, 1]} : vector<2x128xf32> to vector<2x32xf32>
    %276 = vector.extract_strided_slice %267 {offsets = [0, 64], sizes = [2, 32], strides = [1, 1]} : vector<2x128xf32> to vector<2x32xf32>
    %277 = math.tanh %276 : vector<2x32xf32>
    %278 = arith.mulf %274, %261 : vector<2x32xf32>
    %279 = arith.mulf %273, %277 : vector<2x32xf32>
    %280 = arith.addf %278, %279 : vector<2x32xf32>
    %281 = math.tanh %280 : vector<2x32xf32>
    %282 = arith.mulf %275, %281 : vector<2x32xf32>
    %c10_62 = arith.constant 10 : index
    %c0_63 = arith.constant 0 : index
    %283 = vector.load %arg5[%c10_62, %c0_63] : memref<16x32xf32, #tpu.memory_space<vmem>>, vector<2x32xf32>
    tpu.vector_store %arg5[%c10_62, %c0_63], %282 {strides = array<i32>} : memref<16x32xf32, #tpu.memory_space<vmem>>, vector<2x32xf32>,
    %284 = vector.extract_strided_slice %167 {offsets = [12, 0], sizes = [2, 128], strides = [1, 1]} : vector<16x128xf32> to vector<2x128xf32>
    %cst_64 = arith.constant dense<0.000000e+00> : vector<2x128xf32>
    %285 = tpu.matmul %282, %162, %cst_64 {dimension_numbers = #tpu.dot_dimension_numbers<[1], [0], [0], [1], [0, 0, 1, 1], [], []>} : vector<2x32xf32>, vector<32x128xf32>, vector<2x128xf32> -> vector<2x128xf32>
    %286 = arith.addf %284, %285 : vector<2x128xf32>
    %287 = arith.negf %286 : vector<2x128xf32>
    %288 = math.exp %287 : vector<2x128xf32>
    %cst_65 = arith.constant 1.000000e+00 : f32
    %289 = vector.broadcast %cst_65 : f32 to vector<2x128xf32>
    %290 = arith.addf %289, %288 : vector<2x128xf32>
    %291 = arith.divf %289, %290 : vector<2x128xf32>
    %292 = vector.extract_strided_slice %291 {offsets = [0, 0], sizes = [2, 32], strides = [1, 1]} : vector<2x128xf32> to vector<2x32xf32>
    %293 = vector.extract_strided_slice %291 {offsets = [0, 32], sizes = [2, 32], strides = [1, 1]} : vector<2x128xf32> to vector<2x32xf32>
    %294 = vector.extract_strided_slice %291 {offsets = [0, 96], sizes = [2, 32], strides = [1, 1]} : vector<2x128xf32> to vector<2x32xf32>
    %295 = vector.extract_strided_slice %286 {offsets = [0, 64], sizes = [2, 32], strides = [1, 1]} : vector<2x128xf32> to vector<2x32xf32>
    %296 = math.tanh %295 : vector<2x32xf32>
    %297 = arith.mulf %293, %280 : vector<2x32xf32>
    %298 = arith.mulf %292, %296 : vector<2x32xf32>
    %299 = arith.addf %297, %298 : vector<2x32xf32>
    %300 = math.tanh %299 : vector<2x32xf32>
    %301 = arith.mulf %294, %300 : vector<2x32xf32>
    %c12_66 = arith.constant 12 : index
    %c0_67 = arith.constant 0 : index
    %302 = vector.load %arg5[%c12_66, %c0_67] : memref<16x32xf32, #tpu.memory_space<vmem>>, vector<2x32xf32>
    tpu.vector_store %arg5[%c12_66, %c0_67], %301 {strides = array<i32>} : memref<16x32xf32, #tpu.memory_space<vmem>>, vector<2x32xf32>,
    %303 = vector.extract_strided_slice %167 {offsets = [14, 0], sizes = [2, 128], strides = [1, 1]} : vector<16x128xf32> to vector<2x128xf32>
    %cst_68 = arith.constant dense<0.000000e+00> : vector<2x128xf32>
    %304 = tpu.matmul %301, %162, %cst_68 {dimension_numbers = #tpu.dot_dimension_numbers<[1], [0], [0], [1], [0, 0, 1, 1], [], []>} : vector<2x32xf32>, vector<32x128xf32>, vector<2x128xf32> -> vector<2x128xf32>
    %305 = arith.addf %303, %304 : vector<2x128xf32>
    %306 = arith.negf %305 : vector<2x128xf32>
    %307 = math.exp %306 : vector<2x128xf32>
    %cst_69 = arith.constant 1.000000e+00 : f32
    %308 = vector.broadcast %cst_69 : f32 to vector<2x128xf32>
    %309 = arith.addf %308, %307 : vector<2x128xf32>
    %310 = arith.divf %308, %309 : vector<2x128xf32>
    %311 = vector.extract_strided_slice %310 {offsets = [0, 0], sizes = [2, 32], strides = [1, 1]} : vector<2x128xf32> to vector<2x32xf32>
    %312 = vector.extract_strided_slice %310 {offsets = [0, 32], sizes = [2, 32], strides = [1, 1]} : vector<2x128xf32> to vector<2x32xf32>
    %313 = vector.extract_strided_slice %310 {offsets = [0, 96], sizes = [2, 32], strides = [1, 1]} : vector<2x128xf32> to vector<2x32xf32>
    %314 = vector.extract_strided_slice %305 {offsets = [0, 64], sizes = [2, 32], strides = [1, 1]} : vector<2x128xf32> to vector<2x32xf32>
    %315 = math.tanh %314 : vector<2x32xf32>
    %316 = arith.mulf %312, %299 : vector<2x32xf32>
    %317 = arith.mulf %311, %315 : vector<2x32xf32>
    %318 = arith.addf %316, %317 : vector<2x32xf32>
    %319 = math.tanh %318 : vector<2x32xf32>
    %320 = arith.mulf %313, %319 : vector<2x32xf32>
    %c14_70 = arith.constant 14 : index
    %c0_71 = arith.constant 0 : index
    %321 = vector.load %arg5[%c14_70, %c0_71] : memref<16x32xf32, #tpu.memory_space<vmem>>, vector<2x32xf32>
    tpu.vector_store %arg5[%c14_70, %c0_71], %320 {strides = array<i32>} : memref<16x32xf32, #tpu.memory_space<vmem>>, vector<2x32xf32>,
    %c0_72 = arith.constant 0 : index
    %c0_73 = arith.constant 0 : index
    %322 = vector.load %arg5[%c0_72, %c0_73] : memref<16x32xf32, #tpu.memory_space<vmem>>, vector<16x32xf32>
    %323 = vector.extract_strided_slice %322 {offsets = [0, 0], sizes = [2, 32], strides = [1, 1]} : vector<16x32xf32> to vector<2x32xf32>
    %324 = arith.mulf %323, %320 : vector<2x32xf32>
    %cst_74 = arith.constant dense<0.000000e+00> : vector<2xf32>
    %325 = vector.multi_reduction <add>, %324, %cst_74 [1] : vector<2x32xf32> to vector<2xf32>
    %326 = vector.shape_cast %325 : vector<2xf32> to vector<2x1xf32>
    %327 = vector.extract_strided_slice %322 {offsets = [2, 0], sizes = [2, 32], strides = [1, 1]} : vector<16x32xf32> to vector<2x32xf32>
    %328 = arith.mulf %327, %320 : vector<2x32xf32>
    %cst_75 = arith.constant dense<0.000000e+00> : vector<2xf32>
    %329 = vector.multi_reduction <add>, %328, %cst_75 [1] : vector<2x32xf32> to vector<2xf32>
    %330 = vector.shape_cast %329 : vector<2xf32> to vector<2x1xf32>
    %331 = vector.extract_strided_slice %322 {offsets = [4, 0], sizes = [2, 32], strides = [1, 1]} : vector<16x32xf32> to vector<2x32xf32>
    %332 = arith.mulf %331, %320 : vector<2x32xf32>
    %cst_76 = arith.constant dense<0.000000e+00> : vector<2xf32>
    %333 = vector.multi_reduction <add>, %332, %cst_76 [1] : vector<2x32xf32> to vector<2xf32>
    %334 = vector.shape_cast %333 : vector<2xf32> to vector<2x1xf32>
    %335 = vector.extract_strided_slice %322 {offsets = [6, 0], sizes = [2, 32], strides = [1, 1]} : vector<16x32xf32> to vector<2x32xf32>
    %336 = arith.mulf %335, %320 : vector<2x32xf32>
    %cst_77 = arith.constant dense<0.000000e+00> : vector<2xf32>
    %337 = vector.multi_reduction <add>, %336, %cst_77 [1] : vector<2x32xf32> to vector<2xf32>
    %338 = vector.shape_cast %337 : vector<2xf32> to vector<2x1xf32>
    %339 = vector.extract_strided_slice %322 {offsets = [8, 0], sizes = [2, 32], strides = [1, 1]} : vector<16x32xf32> to vector<2x32xf32>
    %340 = arith.mulf %339, %320 : vector<2x32xf32>
    %cst_78 = arith.constant dense<0.000000e+00> : vector<2xf32>
    %341 = vector.multi_reduction <add>, %340, %cst_78 [1] : vector<2x32xf32> to vector<2xf32>
    %342 = vector.shape_cast %341 : vector<2xf32> to vector<2x1xf32>
    %343 = vector.extract_strided_slice %322 {offsets = [10, 0], sizes = [2, 32], strides = [1, 1]} : vector<16x32xf32> to vector<2x32xf32>
    %344 = arith.mulf %343, %320 : vector<2x32xf32>
    %cst_79 = arith.constant dense<0.000000e+00> : vector<2xf32>
    %345 = vector.multi_reduction <add>, %344, %cst_79 [1] : vector<2x32xf32> to vector<2xf32>
    %346 = vector.shape_cast %345 : vector<2xf32> to vector<2x1xf32>
    %347 = vector.extract_strided_slice %322 {offsets = [12, 0], sizes = [2, 32], strides = [1, 1]} : vector<16x32xf32> to vector<2x32xf32>
    %348 = arith.mulf %347, %320 : vector<2x32xf32>
    %cst_80 = arith.constant dense<0.000000e+00> : vector<2xf32>
    %349 = vector.multi_reduction <add>, %348, %cst_80 [1] : vector<2x32xf32> to vector<2xf32>
    %350 = vector.shape_cast %349 : vector<2xf32> to vector<2x1xf32>
    %351 = vector.extract_strided_slice %322 {offsets = [14, 0], sizes = [2, 32], strides = [1, 1]} : vector<16x32xf32> to vector<2x32xf32>
    %352 = arith.mulf %351, %320 : vector<2x32xf32>
    %cst_81 = arith.constant dense<0.000000e+00> : vector<2xf32>
    %353 = vector.multi_reduction <add>, %352, %cst_81 [1] : vector<2x32xf32> to vector<2xf32>
    %354 = vector.shape_cast %353 : vector<2xf32> to vector<2x1xf32>
    %355 = tpu.concatenate %326, %330, %334, %338, %342, %346, %350, %354 in 1 : vector<2x1xf32>, vector<2x1xf32>, vector<2x1xf32>, vector<2x1xf32>, vector<2x1xf32>, vector<2x1xf32>, vector<2x1xf32>, vector<2x1xf32> -> vector<2x8xf32>
    %cst_82 = arith.constant dense<0xFF800000> : vector<2xf32>
    %356 = vector.multi_reduction <maximumf>, %355, %cst_82 [1] : vector<2x8xf32> to vector<2xf32>
    %357 = vector.shape_cast %356 : vector<2xf32> to vector<2x1xf32>
    %358 = vector.broadcast %357 : vector<2x1xf32> to vector<2x8xf32>
    %359 = arith.subf %355, %358 : vector<2x8xf32>
    %360 = math.exp %359 : vector<2x8xf32>
    %cst_83 = arith.constant dense<0.000000e+00> : vector<2xf32>
    %361 = vector.multi_reduction <add>, %360, %cst_83 [1] : vector<2x8xf32> to vector<2xf32>
    %362 = vector.shape_cast %361 : vector<2xf32> to vector<2x1xf32>
    %cst_84 = arith.constant 1.000000e+00 : f32
    %363 = vector.broadcast %cst_84 : f32 to vector<2x1xf32>
    %364 = arith.divf %363, %362 : vector<2x1xf32>
    %365 = vector.broadcast %364 : vector<2x1xf32> to vector<2x8xf32>
    %366 = arith.mulf %360, %365 : vector<2x8xf32>
    %c0_85 = arith.constant 0 : index
    %c0_86 = arith.constant 0 : index
    %367 = vector.load %arg4[%c0_85, %c0_86] : memref<2x8xf32, #tpu.memory_space<vmem>>, vector<2x8xf32>
    tpu.vector_store %arg4[%c0_85, %c0_86], %366 {strides = array<i32>} : memref<2x8xf32, #tpu.memory_space<vmem>>, vector<2x8xf32>,
    %cst_87 = arith.constant 0.000000e+00 : f32
    %368 = vector.broadcast %cst_87 : f32 to vector<2x32xf32>
    %369 = arith.subf %326, %357 : vector<2x1xf32>
    %370 = math.exp %369 : vector<2x1xf32>
    %371 = vector.extract_strided_slice %322 {offsets = [0, 0], sizes = [2, 32], strides = [1, 1]} : vector<16x32xf32> to vector<2x32xf32>
    %372 = vector.broadcast %370 : vector<2x1xf32> to vector<2x32xf32>
    %373 = arith.mulf %372, %371 : vector<2x32xf32>
    %374 = arith.addf %368, %373 : vector<2x32xf32>
    %375 = arith.subf %330, %357 : vector<2x1xf32>
    %376 = math.exp %375 : vector<2x1xf32>
    %377 = vector.extract_strided_slice %322 {offsets = [2, 0], sizes = [2, 32], strides = [1, 1]} : vector<16x32xf32> to vector<2x32xf32>
    %378 = vector.broadcast %376 : vector<2x1xf32> to vector<2x32xf32>
    %379 = arith.mulf %378, %377 : vector<2x32xf32>
    %380 = arith.addf %374, %379 : vector<2x32xf32>
    %381 = arith.subf %334, %357 : vector<2x1xf32>
    %382 = math.exp %381 : vector<2x1xf32>
    %383 = vector.extract_strided_slice %322 {offsets = [4, 0], sizes = [2, 32], strides = [1, 1]} : vector<16x32xf32> to vector<2x32xf32>
    %384 = vector.broadcast %382 : vector<2x1xf32> to vector<2x32xf32>
    %385 = arith.mulf %384, %383 : vector<2x32xf32>
    %386 = arith.addf %380, %385 : vector<2x32xf32>
    %387 = arith.subf %338, %357 : vector<2x1xf32>
    %388 = math.exp %387 : vector<2x1xf32>
    %389 = vector.extract_strided_slice %322 {offsets = [6, 0], sizes = [2, 32], strides = [1, 1]} : vector<16x32xf32> to vector<2x32xf32>
    %390 = vector.broadcast %388 : vector<2x1xf32> to vector<2x32xf32>
    %391 = arith.mulf %390, %389 : vector<2x32xf32>
    %392 = arith.addf %386, %391 : vector<2x32xf32>
    %393 = arith.subf %342, %357 : vector<2x1xf32>
    %394 = math.exp %393 : vector<2x1xf32>
    %395 = vector.extract_strided_slice %322 {offsets = [8, 0], sizes = [2, 32], strides = [1, 1]} : vector<16x32xf32> to vector<2x32xf32>
    %396 = vector.broadcast %394 : vector<2x1xf32> to vector<2x32xf32>
    %397 = arith.mulf %396, %395 : vector<2x32xf32>
    %398 = arith.addf %392, %397 : vector<2x32xf32>
    %399 = arith.subf %346, %357 : vector<2x1xf32>
    %400 = math.exp %399 : vector<2x1xf32>
    %401 = vector.extract_strided_slice %322 {offsets = [10, 0], sizes = [2, 32], strides = [1, 1]} : vector<16x32xf32> to vector<2x32xf32>
    %402 = vector.broadcast %400 : vector<2x1xf32> to vector<2x32xf32>
    %403 = arith.mulf %402, %401 : vector<2x32xf32>
    %404 = arith.addf %398, %403 : vector<2x32xf32>
    %405 = arith.subf %350, %357 : vector<2x1xf32>
    %406 = math.exp %405 : vector<2x1xf32>
    %407 = vector.extract_strided_slice %322 {offsets = [12, 0], sizes = [2, 32], strides = [1, 1]} : vector<16x32xf32> to vector<2x32xf32>
    %408 = vector.broadcast %406 : vector<2x1xf32> to vector<2x32xf32>
    %409 = arith.mulf %408, %407 : vector<2x32xf32>
    %410 = arith.addf %404, %409 : vector<2x32xf32>
    %411 = arith.subf %354, %357 : vector<2x1xf32>
    %412 = math.exp %411 : vector<2x1xf32>
    %413 = vector.extract_strided_slice %322 {offsets = [14, 0], sizes = [2, 32], strides = [1, 1]} : vector<16x32xf32> to vector<2x32xf32>
    %414 = vector.broadcast %412 : vector<2x1xf32> to vector<2x32xf32>
    %415 = arith.mulf %414, %413 : vector<2x32xf32>
    %416 = arith.addf %410, %415 : vector<2x32xf32>
    %417 = vector.broadcast %364 : vector<2x1xf32> to vector<2x32xf32>
    %418 = arith.mulf %416, %417 : vector<2x32xf32>
    %c0_88 = arith.constant 0 : index
    %c0_89 = arith.constant 0 : index
    %419 = vector.load %arg2[%c0_88, %c0_89] : memref<2x32xf32, #tpu.memory_space<vmem>>, vector<1x32xf32>
    %c1 = arith.constant 1 : index
    %c0_90 = arith.constant 0 : index
    %420 = vector.load %arg2[%c1, %c0_90] : memref<2x32xf32, #tpu.memory_space<vmem>>, vector<1x32xf32>
    %cst_91 = arith.constant dense<0.000000e+00> : vector<2xf32>
    %421 = vector.multi_reduction <add>, %418, %cst_91 [1] : vector<2x32xf32> to vector<2xf32>
    %422 = vector.shape_cast %421 : vector<2xf32> to vector<2x1xf32>
    %cst_92 = arith.constant 3.200000e+01 : f32
    %423 = vector.broadcast %cst_92 : f32 to vector<2x1xf32>
    %424 = arith.divf %422, %423 : vector<2x1xf32>
    %425 = vector.broadcast %424 : vector<2x1xf32> to vector<2x32xf32>
    %426 = arith.subf %418, %425 : vector<2x32xf32>
    %427 = arith.mulf %426, %426 : vector<2x32xf32>
    %cst_93 = arith.constant dense<0.000000e+00> : vector<2xf32>
    %428 = vector.multi_reduction <add>, %427, %cst_93 [1] : vector<2x32xf32> to vector<2xf32>
    %429 = vector.shape_cast %428 : vector<2xf32> to vector<2x1xf32>
    %cst_94 = arith.constant 3.200000e+01 : f32
    %430 = vector.broadcast %cst_94 : f32 to vector<2x1xf32>
    %431 = arith.divf %429, %430 : vector<2x1xf32>
    %432 = vector.broadcast %424 : vector<2x1xf32> to vector<2x32xf32>
    %433 = arith.subf %418, %432 : vector<2x32xf32>
    %cst_95 = arith.constant 9.99999974E-6 : f32
    %434 = vector.broadcast %cst_95 : f32 to vector<2x1xf32>
    %435 = arith.addf %431, %434 : vector<2x1xf32>
    %436 = math.rsqrt %435 : vector<2x1xf32>
    %437 = vector.broadcast %436 : vector<2x1xf32> to vector<2x32xf32>
    %438 = arith.mulf %433, %437 : vector<2x32xf32>
    %439 = vector.broadcast %419 : vector<1x32xf32> to vector<2x32xf32>
    %440 = arith.mulf %438, %439 : vector<2x32xf32>
    %441 = vector.broadcast %420 : vector<1x32xf32> to vector<2x32xf32>
    %442 = arith.addf %440, %441 : vector<2x32xf32>
    %c0_96 = arith.constant 0 : index
    %c0_97 = arith.constant 0 : index
    %443 = vector.load %arg3[%c0_96, %c0_97] : memref<2x32xf32, #tpu.memory_space<vmem>>, vector<2x32xf32>
    tpu.vector_store %arg3[%c0_96, %c0_97], %442 {strides = array<i32>} : memref<2x32xf32, #tpu.memory_space<vmem>>, vector<2x32xf32>,
    return
  }
}

</mosaic_0001>

<bundles_post_ra>
// kernel: tpu_custom_call.1
= control target key start
LH: loop header
LB: loop body
LE: loop exit
PB: predicated region body
PF: predicated region fallthrough
CT: control target
= control target key end

     0   :  { %10 = vsyncpa [#allocation4], 0  ;;  %s3238_s0 = inlined_call_operand.hbm [shape: f32[16,16], index: 0, kind: input, shape index: {}]   ;;  %s3239_s1 = inlined_call_operand.hbm [shape: f32[128,128], index: 1, kind: input, shape index: {}]   ;;  %s3240_s2 = inlined_call_operand.vmem [shape: f32[2,32], index: 2, kind: input, shape index: {}]   ;;  %s3241_s3 = inlined_call_operand.hbm [shape: f32[2,32], index: 3, kind: output, shape index: {0}]   ;;  %s3242_s4 = inlined_call_operand.hbm [shape: f32[2,8], index: 4, kind: output, shape index: {1}]  }
   0x1   :  { %11 = vsyncpa [#allocation7], 0 }
   0x2   :  { %12 = vsyncpa [#allocation5], 0 }
   0x3   :  { %13 = vsyncpa [#allocation10], 0  ;;  %s2799_s15 = smov [#allocation3]  }
   0x4   :  { %s19_s16 = sshll.u32 %s2799_s15, 4  ;;  %s20_s16 = int_to_ptr.vmem [resolvable:$true] %s19_s16 }
   0x5   :  { %s2719_s17 = scalar_lea.vmem %s20_s16, 256  ;;  %p2724_p1 = scmp.lt.s32.totalorder %s20_s16, %s20_s16 }
   0x6   :  { %p2720_p0 = scmp.ne.s32.totalorder %s20_s16, %s2719_s17  ;;  %p2725_p2 = scmp.lt.s32.totalorder %s2719_s17, %s2719_s17 }
   0x8   :  { %p2726_p3 = por %p2725_p2, %p2724_p1 }
   0xa   :  { %p2727_p4 = pnand %p2726_p3, %p2720_p0 }
   0xc   :  { %2730 = shalt.err (!%p2727_p4)
}
   0xd   :  { %s2800_s18 = smov 128   ;;  %s2801_s19 = smov 8  }
   0xe   :  { %25 = dma.hbm_to_vmem [thread:$0]  %s3238_s0, 256, %s20_s16, [#allocation4], %s2800_s18, %s2800_s18, %s2801_s19  }
   0xf   :  { %s2802_s22 = smov [#allocation6]  }
  0x10   :  { %s31_s23 = sshll.u32 %s2802_s22, 4  ;;  %s32_s23 = int_to_ptr.vmem [resolvable:$true] %s31_s23 }
  0x11   :  { %s2739_s24 = scalar_lea.vmem %s32_s23, 2048  ;;  %p2744_p6 = scmp.lt.s32.totalorder %s32_s23, %s32_s23 }
  0x12   :  { %p2740_p5 = scmp.ne.s32.totalorder %s32_s23, %s2739_s24  ;;  %p2745_p7 = scmp.lt.s32.totalorder %s2739_s24, %s2739_s24 }
  0x14   :  { %p2746_p8 = por %p2745_p7, %p2744_p6 }
  0x16   :  { %p2747_p9 = pnand %p2746_p8, %p2740_p5 }
  0x18   :  { %2750 = shalt.err (!%p2747_p9)
}
  0x19   :  { %37 = dma.hbm_to_vmem [thread:$0]  %s3239_s1, 2048, %s32_s23, [#allocation7], %s2800_s18, %s2800_s18, %s2801_s19  }
  0x1a   :  { %2791 = dma.done.wait [#allocation4], 256  }
  0x1b   :  { %2792 = vsyncadd [#allocation4], 4294967040 }
  0x1c   :  { %2793 = dma.done.wait [#allocation7], 2048  }
  0x1d   :  { %2794 = vsyncadd [#allocation7], 4294965248  ;;  %v2803_v0 = vmov 0.0   ;;  %vm2804_vm0 = vmmov 0   ;;  %v47_v1 = vld [vmem:[#allocation6 + $0x8] sm:$0xff]  ;;  %v46_v3 = vld [vmem:[#allocation6] sm:$0xff] }
  0x1e   :  { %2361 = vmatprep.subr.mxu1 %v2803_v0  ;;  %2369 = vmatprep.mubr.msk.f32.mxu1 %vm2804_vm0, %v2803_v0  ;;  %v2844_v2 = vld [vmem:[#allocation6 + $0x28] sm:$0xff]  ;;  %v2847_v4 = vld [vmem:[#allocation6 + $0x20] sm:$0xff]  ;;  %v53_v5 = vld [vmem:[#allocation3] sm:$0xff]  ;;  %vm59_vm1 = vcmask 130048   ;;  %s2805_s0 = smov 64   ;;  %s2806_s1 = smov 32  }
  0x1f   :  { %2354 = vmatprep.subr.mxu0 %v47_v1  ;;  %2362 = vmatpush3.msra.mxu1 %v2844_v2  ;;  %v54_v6 = vld [vmem:[#allocation3 + $0x8] sm:$0xff]  ;;  %v2854_v8 = vld [vmem:[#allocation6 + $0x10] sm:$0xff]  ;;  %vm244_vm2 = vcmask 254976   ;;  %vm141_vm3 = vcmask 261120   ;;  %vm353_vm4 = vcmask 257026   ;;  %vm577_vm5 = vcmask 261126  }
  0x20   :  { %2355 = vmatpush3.msra.mxu0 %v47_v1  ;;  %2363 = vmatprep.subr.mxu1 %v2803_v0  ;;  %v2851_v7 = vld [vmem:[#allocation6 + $0x18] sm:$0xff]  ;;  %v2226_v9 = vld [vmem:[#allocation6 + $0x30] ss:$0 sm:$0xff]  ;;  %vm465_vm6 = vcmask 259076   ;;  %vm2045_vm7 = vcmask 7168   ;;  %vm2047_vm8 = vcmask 15360  }
  0x21   :  { %2356 = vmatprep.subr.mxu0 %v46_v3  ;;  %2364 = vmatpush3.msra.mxu1 %v2847_v4  ;;  %vm2049_vm9 = vcmask 23552   ;;  %vm2051_vm10 = vcmask 31744   ;;  %vm2053_vm11 = vcmask 39936   ;;  %vm2055_vm12 = vcmask 48128   ;;  %s2808_s27 = smov [#allocation9]  }
  0x22   :  { %2357 = vmatpush3.msra.mxu0 %v46_v3  ;;  %2358 = vmatprep.mubr.msk.f32.mxu0 %vm59_vm1, %v53_v5  ;;  %vm2057_vm13 = vcmask 56320   ;;  %vm2059_vm14 = vcmask 58368   ;;  %s2212_s28 = sshll.u32 %s2808_s27, 4  ;;  %s2213_s28 = int_to_ptr.vmem [resolvable:$true] %s2212_s28 }
  0x23   :  { %2365 = vmatprep.subr.mxu1 %v2803_v0  ;;  %2359 = vmatmul.mubr.msk.f32.vlgmr.msra.gmra.mxu0 %vm59_vm1, %v54_v6  ;;  %s2751_s29 = scalar_lea.vmem %s2213_s28, 32  ;;  %p2756_p11 = scmp.lt.s32.totalorder %s2213_s28, %s2213_s28 }
  0x24   :  { %2366 = vmatpush3.msra.mxu1 %v2851_v7  ;;  %2372 = vmatprep.subr.mxu0 %v2803_v0  ;;  %p2752_p10 = scmp.ne.s32.totalorder %s2213_s28, %s2751_s29  ;;  %p2757_p12 = scmp.lt.s32.totalorder %s2751_s29, %s2751_s29 }
  0x25   :  { %2367 = vmatprep.subr.mxu1 %v2803_v0  ;;  %2373 = vmatpush3.msra.mxu0 %v2844_v2 }
  0x26   :  { %2368 = vmatpush3.msra.mxu1 %v2854_v8  ;;  %2374 = vmatprep.subr.mxu0 %v2803_v0  ;;  %p2758_p13 = por %p2757_p12, %p2756_p11 }
  0x27   :  { %2370 = vmatmul.mubr.f32.vlgmr.msra.gmra.mxu1 %v2803_v0  ;;  %2375 = vmatpush3.msra.mxu0 %v2847_v4 }
  0x28   :  { %2376 = vmatprep.subr.mxu0 %v2803_v0  ;;  %2380 = vmatprep.mubr.msk.f32.mxu0 %vm2804_vm0, %v2803_v0  ;;  %p2759_p0 = pnand %p2758_p13, %p2752_p10 }
  0x29   :  { %2377 = vmatpush3.msra.mxu0 %v2851_v7  ;;  %2383 = vmatprep.subr.mxu1 %v2803_v0 }
  0x2a   :  { %2378 = vmatprep.subr.mxu0 %v2803_v0  ;;  %2384 = vmatpush3.msra.mxu1 %v2844_v2 }
  0x2b   :  { %2379 = vmatpush3.msra.mxu0 %v2854_v8  ;;  %2385 = vmatprep.subr.mxu1 %v2803_v0 }
  0x2c   :  { %2386 = vmatpush3.msra.mxu1 %v2847_v4  ;;  %2391 = vmatprep.mubr.msk.f32.mxu1 %vm2804_vm0, %v2803_v0 }
  0x2d   :  { %2387 = vmatprep.subr.mxu1 %v2803_v0  ;;  %2394 = vmatprep.subr.mxu0 %v2803_v0 }
  0x2e   :  { %2388 = vmatpush3.msra.mxu1 %v2851_v7 }
  0x2f   :  { %2389 = vmatprep.subr.mxu1 %v2803_v0 }
  0x30   :  { %2390 = vmatpush3.msra.mxu1 %v2854_v8 }
  0x31   :  { %2405 = vmatprep.subr.mxu1 %v2803_v0 }
  0xe3   :  { %v2360_v10 = vpop.f32.mrf.mxu0 }
  0xe4   :  { %v2882_v11 = vadd.f32 %v2360_v10, %v2226_v9 }
  0xe5   :  { %v132_v12 = vpop.f32.mrf.mxu0 }
  0xe6   :  { %v2884_v13 = vadd.f32 %v2226_v9, %v132_v12 }
  0xe7   :  { %v211_v14 = vpop.f32.mrf.mxu1 }
  0xe8   :  { %v215_v15 = vadd.f32 %v211_v14, %v2884_v13 }
  0xe9   :  { %v2371_v16 = vpop.f32.mrf.mxu1 }
  0xea   :  { %2561 = vtanh.f32 %v215_v15  ;;  %v2229_v18 = vmul.f32 -1.442695, %v215_v15 }
  0xec   :  { %2563 = vpow2.f32 %v2229_v18 }
  0xf7   :  { %v2562_v17 = vpop.eup %2561 }
  0xf8   :  { %225 = vrot.lane.b32.xlu0 %v2562_v17, %s2805_s0 }
  0xf9   :  { %v2564_v19 = vpop.eup %2563 }
  0xfa   :  { %v219_v20 = vadd.f32 1.0, %v2564_v19 }
  0xfc   :  { %2565 = vrcp.f32 %v219_v20 }
 0x109   :  { %v2566_v21 = vpop.eup %2565 }
 0x10a   :  { %v223_v24 = vmul.f32 0.0, %v2566_v21 }
 0x16a   :  { %v226_v22 = vpop.permute.xlu0 %225 }
 0x16b   :  { %v228_v23 = vmul.f32 %v2566_v21, %v226_v22 }
 0x16d   :  { %230 = vrot.lane.b32.xlu0 %v228_v23, %s2806_s1 }
 0x1df   :  { %v231_v25 = vpop.permute.xlu0 %230 }
 0x1e0   :  { %v233_v26 = vadd.f32 %v231_v25, %v223_v24 }
 0x1e2   :  { %2567 = vtanh.f32 %v233_v26  ;;  %v330_v42 = vrot.slane %v233_v26, 6 }
 0x1ef   :  { %v2568_v27 = vpop.eup %2567 }
 0x1f0   :  { %236 = vrot.lane.b32.xlu1 %v2568_v27, %s2805_s0 }
 0x262   :  { %v237_v28 = vpop.permute.xlu1 %236 }
 0x263   :  { %v239_v29 = vmul.f32 %v2566_v21, %v237_v28 }
 0x265   :  { %241 = vrot.lane.b32.xlu1 %v239_v29, %s2806_s1 }
 0x2d7   :  { %v242_v30 = vpop.permute.xlu1 %241 }
 0x2d8   :  { %245 = vst.msk [vmem:[#allocation2] sm:$0x3] %vm244_vm2, %v242_v30  ;;  %2381 = vmatmul.mubr.msk.f32.vlgmr.msra.gmra.mxu0 %vm141_vm3, %v242_v30 }
 0x2d9   :  { %2395 = vmatpush3.msra.mxu0 %v2844_v2  ;;  %2402 = vmatprep.mubr.msk.f32.mxu0 %vm2804_vm0, %v2803_v0 }
 0x2da   :  { %2396 = vmatprep.subr.mxu0 %v2803_v0 }
 0x2db   :  { %2397 = vmatpush3.msra.mxu0 %v2847_v4 }
 0x2dc   :  { %2398 = vmatprep.subr.mxu0 %v2803_v0 }
 0x2dd   :  { %2399 = vmatpush3.msra.mxu0 %v2851_v7 }
 0x2de   :  { %2400 = vmatprep.subr.mxu0 %v2803_v0 }
 0x2df   :  { %2401 = vmatpush3.msra.mxu0 %v2854_v8 }
 0x2e0   :  { %2416 = vmatprep.subr.mxu0 %v2803_v0 }
 0x398   :  { %v314_v31 = vpop.f32.mrf.mxu0 }
 0x399   :  { %v319_v32 = vrot.slane %v314_v31, 6 }
 0x39a   :  { %v2382_v33 = vpop.f32.mrf.mxu0 }
 0x39b   :  { %v321_v34 = vadd.f32 %v319_v32, %v2884_v13 }
 0x39d   :  { %2569 = vtanh.f32 %v321_v34  ;;  %v2231_v36 = vmul.f32 -1.442695, %v321_v34 }
 0x39f   :  { %2571 = vpow2.f32 %v2231_v36 }
 0x3aa   :  { %v2570_v35 = vpop.eup %2569 }
 0x3ab   :  { %334 = vrot.lane.b32.xlu0 %v2570_v35, %s2805_s0 }
 0x3ac   :  { %v2572_v37 = vpop.eup %2571 }
 0x3ad   :  { %v325_v38 = vadd.f32 1.0, %v2572_v37 }
 0x3af   :  { %2573 = vrcp.f32 %v325_v38 }
 0x3bc   :  { %v2574_v39 = vpop.eup %2573 }
 0x3bd   :  { %v332_v43 = vmul.f32 %v2574_v39, %v330_v42 }
 0x41d   :  { %v335_v40 = vpop.permute.xlu0 %334 }
 0x41e   :  { %v337_v41 = vmul.f32 %v2574_v39, %v335_v40 }
 0x420   :  { %339 = vrot.lane.b32.xlu1 %v337_v41, %s2806_s1 }
 0x492   :  { %v340_v44 = vpop.permute.xlu1 %339 }
 0x493   :  { %v342_v45 = vadd.f32 %v340_v44, %v332_v43 }
 0x495   :  { %2575 = vtanh.f32 %v342_v45  ;;  %v442_v62 = vrot.slane %v342_v45, 6 }
 0x4a2   :  { %v2576_v46 = vpop.eup %2575 }
 0x4a3   :  { %345 = vrot.lane.b32.xlu0 %v2576_v46, %s2805_s0 }
 0x515   :  { %v346_v47 = vpop.permute.xlu0 %345 }
 0x516   :  { %v2907_v48 = vmul.f32 %v2574_v39, %v346_v47 }
 0x518   :  { %v355_v49 = vrot.slane %v2907_v48, 2 }
 0x51a   :  { %356 = vrot.lane.b32.xlu1 %v355_v49, %s2806_s1 }
 0x58c   :  { %v357_v50 = vpop.permute.xlu1 %356 }
 0x58d   :  { %2392 = vmatmul.mubr.msk.f32.vlgmr.msra.gmra.mxu1 %vm141_vm3, %v357_v50 }
 0x58e   :  { %2406 = vmatpush3.msra.mxu1 %v2844_v2  ;;  %2413 = vmatprep.mubr.msk.f32.mxu1 %vm2804_vm0, %v2803_v0 }
 0x58f   :  { %2407 = vmatprep.subr.mxu1 %v2803_v0 }
 0x590   :  { %2408 = vmatpush3.msra.mxu1 %v2847_v4 }
 0x591   :  { %2409 = vmatprep.subr.mxu1 %v2803_v0 }
 0x592   :  { %2410 = vmatpush3.msra.mxu1 %v2851_v7 }
 0x593   :  { %2411 = vmatprep.subr.mxu1 %v2803_v0 }
 0x594   :  { %2412 = vmatpush3.msra.mxu1 %v2854_v8 }
 0x595   :  { %2427 = vmatprep.subr.mxu1 %v2803_v0 }
 0x64d   :  { %v426_v51 = vpop.f32.mrf.mxu1 }
 0x64e   :  { %v431_v52 = vrot.slane %v426_v51, 4 }
 0x64f   :  { %v2393_v53 = vpop.f32.mrf.mxu1 }
 0x650   :  { %v433_v54 = vadd.f32 %v431_v52, %v2884_v13 }
 0x652   :  { %2577 = vtanh.f32 %v433_v54  ;;  %v2233_v56 = vmul.f32 -1.442695, %v433_v54 }
 0x654   :  { %2579 = vpow2.f32 %v2233_v56 }
 0x65f   :  { %v2578_v55 = vpop.eup %2577 }
 0x660   :  { %446 = vrot.lane.b32.xlu0 %v2578_v55, %s2805_s0 }
 0x661   :  { %v2580_v57 = vpop.eup %2579 }
 0x662   :  { %v437_v58 = vadd.f32 1.0, %v2580_v57 }
 0x664   :  { %2581 = vrcp.f32 %v437_v58 }
 0x671   :  { %v2582_v59 = vpop.eup %2581 }
 0x672   :  { %v444_v63 = vmul.f32 %v2582_v59, %v442_v62 }
 0x6d2   :  { %v447_v60 = vpop.permute.xlu0 %446 }
 0x6d3   :  { %v449_v61 = vmul.f32 %v2582_v59, %v447_v60 }
 0x6d5   :  { %451 = vrot.lane.b32.xlu1 %v449_v61, %s2806_s1 }
 0x747   :  { %v452_v1 = vpop.permute.xlu1 %451 }
 0x748   :  { %v454_v3 = vadd.f32 %v452_v1, %v444_v63 }
 0x74a   :  { %2583 = vtanh.f32 %v454_v3  ;;  %v554_v25 = vrot.slane %v454_v3, 6 }
 0x757   :  { %v2584_v5 = vpop.eup %2583 }
 0x758   :  { %457 = vrot.lane.b32.xlu0 %v2584_v5, %s2805_s0 }
 0x7ca   :  { %v458_v6 = vpop.permute.xlu0 %457 }
 0x7cb   :  { %v2926_v9 = vmul.f32 %v2582_v59, %v458_v6 }
 0x7cd   :  { %v467_v10 = vrot.slane %v2926_v9, 4 }
 0x7cf   :  { %468 = vrot.lane.b32.xlu1 %v467_v10, %s2806_s1 }
 0x841   :  { %v469_v12 = vpop.permute.xlu1 %468 }
 0x842   :  { %2403 = vmatmul.mubr.msk.f32.vlgmr.msra.gmra.mxu0 %vm141_vm3, %v469_v12 }
 0x843   :  { %2417 = vmatpush3.msra.mxu0 %v2844_v2  ;;  %2424 = vmatprep.mubr.msk.f32.mxu0 %vm2804_vm0, %v2803_v0 }
 0x844   :  { %2418 = vmatprep.subr.mxu0 %v2803_v0 }
 0x845   :  { %2419 = vmatpush3.msra.mxu0 %v2847_v4 }
 0x846   :  { %2420 = vmatprep.subr.mxu0 %v2803_v0 }
 0x847   :  { %2421 = vmatpush3.msra.mxu0 %v2851_v7 }
 0x848   :  { %2422 = vmatprep.subr.mxu0 %v2803_v0 }
 0x849   :  { %2423 = vmatpush3.msra.mxu0 %v2854_v8 }
 0x84a   :  { %2438 = vmatprep.subr.mxu0 %v2803_v0 }
 0x902   :  { %v538_v14 = vpop.f32.mrf.mxu0 }
 0x903   :  { %v543_v15 = vrot.slane %v538_v14, 2 }
 0x904   :  { %v2404_v16 = vpop.f32.mrf.mxu0 }
 0x905   :  { %v545_v17 = vadd.f32 %v543_v15, %v2884_v13 }
 0x907   :  { %2585 = vtanh.f32 %v545_v17  ;;  %v2235_v19 = vmul.f32 -1.442695, %v545_v17 }
 0x909   :  { %2587 = vpow2.f32 %v2235_v19 }
 0x914   :  { %v2586_v18 = vpop.eup %2585 }
 0x915   :  { %558 = vrot.lane.b32.xlu0 %v2586_v18, %s2805_s0 }
 0x916   :  { %v2588_v20 = vpop.eup %2587 }
 0x917   :  { %v549_v21 = vadd.f32 1.0, %v2588_v20 }
 0x919   :  { %2589 = vrcp.f32 %v549_v21 }
 0x926   :  { %v2590_v22 = vpop.eup %2589 }
 0x927   :  { %v556_v26 = vmul.f32 %v2590_v22, %v554_v25 }
 0x987   :  { %v559_v23 = vpop.permute.xlu0 %558 }
 0x988   :  { %v561_v24 = vmul.f32 %v2590_v22, %v559_v23 }
 0x98a   :  { %563 = vrot.lane.b32.xlu1 %v561_v24, %s2806_s1 }
 0x9fc   :  { %v564_v27 = vpop.permute.xlu1 %563 }
 0x9fd   :  { %v566_v28 = vadd.f32 %v564_v27, %v556_v26 }
 0x9ff   :  { %2591 = vtanh.f32 %v566_v28  ;;  %v663_v43 = vrot.slane %v566_v28, 6 }
 0xa0c   :  { %v2592_v13 = vpop.eup %2591 }
 0xa0d   :  { %569 = vrot.lane.b32.xlu0 %v2592_v13, %s2805_s0 }
 0xa7f   :  { %v570_v29 = vpop.permute.xlu0 %569 }
 0xa80   :  { %v2945_v30 = vmul.f32 %v2590_v22, %v570_v29 }
 0xa82   :  { %v579_v31 = vrot.slane %v2945_v30, 6 }
 0xa84   :  { %580 = vrot.lane.b32.xlu1 %v579_v31, %s2806_s1 }
 0xaf6   :  { %v581_v32 = vpop.permute.xlu1 %580 }
 0xaf7   :  { %2414 = vmatmul.mubr.msk.f32.vlgmr.msra.gmra.mxu1 %vm141_vm3, %v581_v32 }
 0xaf8   :  { %2428 = vmatpush3.msra.mxu1 %v2844_v2  ;;  %2435 = vmatprep.mubr.msk.f32.mxu1 %vm2804_vm0, %v2803_v0 }
 0xaf9   :  { %2429 = vmatprep.subr.mxu1 %v2803_v0 }
 0xafa   :  { %2430 = vmatpush3.msra.mxu1 %v2847_v4 }
 0xafb   :  { %2431 = vmatprep.subr.mxu1 %v2803_v0 }
 0xafc   :  { %2432 = vmatpush3.msra.mxu1 %v2851_v7 }
 0xafd   :  { %2433 = vmatprep.subr.mxu1 %v2803_v0 }
 0xafe   :  { %2434 = vmatpush3.msra.mxu1 %v2854_v8 }
 0xbb7   :  { %v650_v33 = vpop.f32.mrf.mxu1 }
 0xbb8   :  { %v654_v34 = vadd.f32 %v650_v33, %v2882_v11 }
 0xbb9   :  { %v2415_v35 = vpop.f32.mrf.mxu1 }
 0xbba   :  { %2593 = vtanh.f32 %v654_v34  ;;  %v2237_v37 = vmul.f32 -1.442695, %v654_v34 }
 0xbbc   :  { %2595 = vpow2.f32 %v2237_v37 }
 0xbc7   :  { %v2594_v36 = vpop.eup %2593 }
 0xbc8   :  { %667 = vrot.lane.b32.xlu0 %v2594_v36, %s2805_s0 }
 0xbc9   :  { %v2596_v38 = vpop.eup %2595 }
 0xbca   :  { %v658_v39 = vadd.f32 1.0, %v2596_v38 }
 0xbcc   :  { %2597 = vrcp.f32 %v658_v39 }
 0xbd9   :  { %v2598_v40 = vpop.eup %2597 }
 0xbda   :  { %v665_v44 = vmul.f32 %v2598_v40, %v663_v43 }
 0xc3a   :  { %v668_v41 = vpop.permute.xlu0 %667 }
 0xc3b   :  { %v670_v42 = vmul.f32 %v2598_v40, %v668_v41 }
 0xc3d   :  { %672 = vrot.lane.b32.xlu1 %v670_v42, %s2806_s1 }
 0xcaf   :  { %v673_v45 = vpop.permute.xlu1 %672 }
 0xcb0   :  { %v675_v46 = vadd.f32 %v673_v45, %v665_v44 }
 0xcb2   :  { %2599 = vtanh.f32 %v675_v46 }
 0xcbf   :  { %v2600_v47 = vpop.eup %2599 }
 0xcc0   :  { %678 = vrot.lane.b32.xlu0 %v2600_v47, %s2805_s0 }
 0xd32   :  { %v679_v49 = vpop.permute.xlu0 %678 }
 0xd33   :  { %v681_v50 = vmul.f32 %v2598_v40, %v679_v49  ;;  %v1020_v49 = vld [vmem:[#allocation6 + $0x50] sm:$0xff] }
 0xd34   :  { %2449 = vmatprep.subr.mxu1 %v1020_v49 }
 0xd35   :  { %683 = vrot.lane.b32.xlu1 %v681_v50, %s2806_s1  ;;  %v1019_v50 = vld [vmem:[#allocation6 + $0x48] sm:$0xff] }
 0xda7   :  { %v684_v51 = vpop.permute.xlu1 %683 }
 0xda8   :  { %686 = vst.msk [vmem:[#allocation2 + $0x8] sm:$0x3] %vm244_vm2, %v684_v51  ;;  %2425 = vmatmul.mubr.msk.f32.vlgmr.msra.gmra.mxu0 %vm141_vm3, %v684_v51  ;;  %v3009_v51 = vld [vmem:[#allocation6 + $0x70] sm:$0xff] }
 0xda9   :  { %2439 = vmatpush3.msra.mxu0 %v2844_v2  ;;  %2446 = vmatprep.mubr.msk.f32.mxu0 %vm2804_vm0, %v2803_v0 }
 0xdaa   :  { %2440 = vmatprep.subr.mxu0 %v2803_v0 }
 0xdab   :  { %2441 = vmatpush3.msra.mxu0 %v2847_v4 }
 0xdac   :  { %2442 = vmatprep.subr.mxu0 %v2803_v0 }
 0xdad   :  { %2443 = vmatpush3.msra.mxu0 %v2851_v7 }
 0xdae   :  { %2444 = vmatprep.subr.mxu0 %v2803_v0 }
 0xdaf   :  { %2445 = vmatpush3.msra.mxu0 %v2854_v8  ;;  %v771_v8 = vrot.slane %v675_v46, 6 }
 0xdb0   :  { %2460 = vmatprep.subr.mxu0 %v2803_v0 }
 0xe68   :  { %v755_v52 = vpop.f32.mrf.mxu0 }
 0xe69   :  { %v760_v53 = vrot.slane %v755_v52, 6  ;;  %v3012_v52 = vld [vmem:[#allocation6 + $0x68] sm:$0xff] }
 0xe6a   :  { %v2426_v2 = vpop.f32.mrf.mxu0 }
 0xe6b   :  { %v762_v54 = vadd.f32 %v760_v53, %v2882_v11  ;;  %v1018_v53 = vld [vmem:[#allocation6 + $0x40] sm:$0xff] }
 0xe6c   :  { %v3015_v2 = vld [vmem:[#allocation6 + $0x60] sm:$0xff] }
 0xe6d   :  { %2601 = vtanh.f32 %v762_v54  ;;  %v2239_v4 = vmul.f32 -1.442695, %v762_v54  ;;  %v3021_v54 = vld [vmem:[#allocation6 + $0x58] sm:$0xff] }
 0xe6f   :  { %2603 = vpow2.f32 %v2239_v4 }
 0xe7a   :  { %v2602_v55 = vpop.eup %2601 }
 0xe7b   :  { %775 = vrot.lane.b32.xlu0 %v2602_v55, %s2805_s0 }
 0xe7c   :  { %v2604_v56 = vpop.eup %2603 }
 0xe7d   :  { %v766_v57 = vadd.f32 1.0, %v2604_v56 }
 0xe7f   :  { %2605 = vrcp.f32 %v766_v57 }
 0xe8c   :  { %v2606_v7 = vpop.eup %2605 }
 0xe8d   :  { %v773_v60 = vmul.f32 %v2606_v7, %v771_v8 }
 0xeed   :  { %v776_v58 = vpop.permute.xlu0 %775 }
 0xeee   :  { %v778_v59 = vmul.f32 %v2606_v7, %v776_v58 }
 0xef0   :  { %780 = vrot.lane.b32.xlu1 %v778_v59, %s2806_s1 }
 0xf62   :  { %v781_v61 = vpop.permute.xlu1 %780 }
 0xf63   :  { %v783_v62 = vadd.f32 %v781_v61, %v773_v60  ;;  %v2244_v61 = vld [vmem:[#allocation6 + $0x78] ss:$0 sm:$0xff] }
 0xf65   :  { %2607 = vtanh.f32 %v783_v62  ;;  %v882_v23 = vrot.slane %v783_v62, 6 }
 0xf72   :  { %v2608_v63 = vpop.eup %2607 }
 0xf73   :  { %786 = vrot.lane.b32.xlu0 %v2608_v63, %s2805_s0 }
 0xfe5   :  { %v787_v1 = vpop.permute.xlu0 %786 }
 0xfe6   :  { %v2980_v3 = vmul.f32 %v2606_v7, %v787_v1 }
 0xfe8   :  { %v795_v5 = vrot.slane %v2980_v3, 2 }
 0xfea   :  { %796 = vrot.lane.b32.xlu1 %v795_v5, %s2806_s1 }
0x105c   :  { %v797_v6 = vpop.permute.xlu1 %796 }
0x105d   :  { %2436 = vmatmul.mubr.msk.f32.vlgmr.msra.gmra.mxu1 %vm141_vm3, %v797_v6 }
0x105e   :  { %2450 = vmatpush3.msra.mxu1 %v1020_v49 }
0x105f   :  { %2451 = vmatprep.subr.mxu1 %v1019_v50 }
0x1060   :  { %2452 = vmatpush3.msra.mxu1 %v1019_v50 }
0x1061   :  { %2453 = vmatprep.subr.mxu1 %v1018_v53 }
0x1062   :  { %2454 = vmatpush3.msra.mxu1 %v1018_v53 }
0x111d   :  { %v866_v10 = vpop.f32.mrf.mxu1 }
0x111e   :  { %v871_v12 = vrot.slane %v866_v10, 4 }
0x111f   :  { %v2437_v14 = vpop.f32.mrf.mxu1 }
0x1120   :  { %v873_v15 = vadd.f32 %v871_v12, %v2882_v11 }
0x1122   :  { %2609 = vtanh.f32 %v873_v15  ;;  %v2241_v17 = vmul.f32 -1.442695, %v873_v15 }
0x1124   :  { %2611 = vpow2.f32 %v2241_v17 }
0x112f   :  { %v2610_v16 = vpop.eup %2609 }
0x1130   :  { %886 = vrot.lane.b32.xlu0 %v2610_v16, %s2805_s0 }
0x1131   :  { %v2612_v18 = vpop.eup %2611 }
0x1132   :  { %v877_v19 = vadd.f32 1.0, %v2612_v18 }
0x1134   :  { %2613 = vrcp.f32 %v877_v19 }
0x1141   :  { %v2614_v20 = vpop.eup %2613 }
0x1142   :  { %v884_v24 = vmul.f32 %v2614_v20, %v882_v23 }
0x11a2   :  { %v887_v21 = vpop.permute.xlu0 %886 }
0x11a3   :  { %v889_v22 = vmul.f32 %v2614_v20, %v887_v21 }
0x11a5   :  { %891 = vrot.lane.b32.xlu1 %v889_v22, %s2806_s1 }
0x1217   :  { %v892_v25 = vpop.permute.xlu1 %891 }
0x1218   :  { %v894_v26 = vadd.f32 %v892_v25, %v884_v24 }
0x121a   :  { %2615 = vtanh.f32 %v894_v26 }
0x1227   :  { %v2616_v27 = vpop.eup %2615 }
0x1228   :  { %897 = vrot.lane.b32.xlu0 %v2616_v27, %s2805_s0 }
0x129a   :  { %v898_v28 = vpop.permute.xlu0 %897 }
0x129b   :  { %v900_v13 = vmul.f32 %v2614_v20, %v898_v28 }
0x129d   :  { %v906_v29 = vrot.slane %v900_v13, 4 }
0x129f   :  { %907 = vrot.lane.b32.xlu1 %v906_v29, %s2806_s1 }
0x1311   :  { %v908_v31 = vpop.permute.xlu1 %907 }
0x1312   :  { %2447 = vmatmul.mubr.msk.f32.vlgmr.msra.gmra.mxu0 %vm141_vm3, %v908_v31 }
0x1313   :  { %2468 = vmatprep.mubr.msk.f32.mxu0 %vm2804_vm0, %v2803_v0  ;;  %2461 = vmatpush3.msra.mxu0 %v3009_v51 }
0x1314   :  { %2462 = vmatprep.subr.mxu0 %v2803_v0 }
0x1315   :  { %2463 = vmatpush3.msra.mxu0 %v3012_v52 }
0x1316   :  { %2464 = vmatprep.subr.mxu0 %v2803_v0 }
0x1317   :  { %2465 = vmatpush3.msra.mxu0 %v3015_v2 }
0x1318   :  { %2466 = vmatprep.subr.mxu0 %v2803_v0 }
0x1319   :  { %2467 = vmatpush3.msra.mxu0 %v3021_v54 }
0x131a   :  { %2469 = vmatmul.mubr.f32.vlgmr.msra.gmra.mxu0 %v2803_v0  ;;  %2482 = vmatprep.subr.mxu0 %v2803_v0 }
0x131b   :  { %2483 = vmatpush3.msra.mxu0 %v3009_v51  ;;  %2490 = vmatprep.mubr.msk.f32.mxu0 %vm2804_vm0, %v2803_v0 }
0x131c   :  { %2484 = vmatprep.subr.mxu0 %v2803_v0 }
0x131d   :  { %2485 = vmatpush3.msra.mxu0 %v3012_v52 }
0x131e   :  { %2486 = vmatprep.subr.mxu0 %v2803_v0 }
0x131f   :  { %2487 = vmatpush3.msra.mxu0 %v3015_v2 }
0x1320   :  { %2488 = vmatprep.subr.mxu0 %v2803_v0 }
0x1321   :  { %2489 = vmatpush3.msra.mxu0 %v3021_v54 }
0x1322   :  { %2504 = vmatprep.subr.mxu0 %v2803_v0 }
0x13d2   :  { %v977_v32 = vpop.f32.mrf.mxu0 }
0x13d3   :  { %v982_v33 = vrot.slane %v977_v32, 2 }
0x13d4   :  { %v2448_v34 = vpop.f32.mrf.mxu0 }
0x13d5   :  { %v984_v35 = vadd.f32 %v982_v33, %v2882_v11  ;;  %v993_v11 = vrot.slane %v894_v26, 6 }
0x13d7   :  { %2617 = vtanh.f32 %v984_v35  ;;  %v2243_v37 = vmul.f32 -1.442695, %v984_v35 }
0x13d9   :  { %2619 = vpow2.f32 %v2243_v37 }
0x13da   :  { %v1179_v8 = vpop.f32.mrf.mxu0 }
0x13dc   :  { %v2470_v60 = vpop.f32.mrf.mxu0 }
0x13e4   :  { %v2618_v36 = vpop.eup %2617 }
0x13e5   :  { %997 = vrot.lane.b32.xlu0 %v2618_v36, %s2805_s0 }
0x13e6   :  { %v2620_v38 = vpop.eup %2619 }
0x13e7   :  { %v988_v39 = vadd.f32 1.0, %v2620_v38 }
0x13e9   :  { %2621 = vrcp.f32 %v988_v39 }
0x13f6   :  { %v2622_v40 = vpop.eup %2621 }
0x13f7   :  { %v995_v43 = vmul.f32 %v2622_v40, %v993_v11 }
0x1457   :  { %v998_v41 = vpop.permute.xlu0 %997 }
0x1458   :  { %v1000_v42 = vmul.f32 %v2622_v40, %v998_v41 }
0x145a   :  { %1002 = vrot.lane.b32.xlu1 %v1000_v42, %s2806_s1 }
0x145e   :  { %350 = vrot.lane.b32.xlu1 %v2907_v48, %s2806_s1 }
0x1462   :  { %574 = vrot.lane.b32.xlu1 %v2945_v30, %s2806_s1 }
0x1466   :  { %902 = vrot.lane.b32.xlu1 %v900_v13, %s2806_s1 }
0x14cc   :  { %v1003_v44 = vpop.permute.xlu1 %1002 }
0x14cd   :  { %v1005_v45 = vadd.f32 %v1003_v44, %v995_v43 }
0x14cf   :  { %2623 = vtanh.f32 %v1005_v45 }
0x14d0   :  { %v351_v46 = vpop.permute.xlu1 %350 }
0x14d1   :  { %354 = vst.msk [vmem:[#allocation2] sm:$0xc] %vm353_vm4, %v351_v46 }
0x14d4   :  { %v575_v47 = vpop.permute.xlu1 %574 }
0x14d5   :  { %578 = vst.msk [vmem:[#allocation2] sm:$0xc0] %vm577_vm5, %v575_v47 }
0x14d8   :  { %v903_v48 = vpop.permute.xlu1 %902 }
0x14d9   :  { %905 = vst.msk [vmem:[#allocation2 + $0x8] sm:$0x30] %vm465_vm6, %v903_v48 }
0x14dc   :  { %v2624_v30 = vpop.eup %2623 }
0x14dd   :  { %1008 = vrot.lane.b32.xlu0 %v2624_v30, %s2805_s0 }
0x14e1   :  { %462 = vrot.lane.b32.xlu0 %v2926_v9, %s2806_s1  ;;  %v1017_v9 = vld [vmem:[#allocation6 + $0x38] sm:$0xff] }
0x14e2   :  { %2455 = vmatprep.subr.mxu1 %v1017_v9 }
0x14e3   :  { %2456 = vmatpush3.msra.mxu1 %v1017_v9 }
0x14e4   :  { %2471 = vmatprep.subr.mxu1 %v2803_v0 }
0x14e5   :  { %791 = vrot.lane.b32.xlu0 %v2980_v3, %s2806_s1 }
0x154f   :  { %v1009_v55 = vpop.permute.xlu0 %1008 }
0x1550   :  { %v1011_v4 = vmul.f32 %v2622_v40, %v1009_v55 }
0x1552   :  { %1013 = vrot.lane.b32.xlu0 %v1011_v4, %s2806_s1 }
0x1553   :  { %v463_v56 = vpop.permute.xlu0 %462 }
0x1554   :  { %466 = vst.msk [vmem:[#allocation2] sm:$0x30] %vm465_vm6, %v463_v56 }
0x1557   :  { %v792_v57 = vpop.permute.xlu0 %791 }
0x1558   :  { %794 = vst.msk [vmem:[#allocation2 + $0x8] sm:$0xc] %vm353_vm4, %v792_v57 }
0x155b   :  { %v1026_v7 = vld [vmem:[#allocation2] sm:$0xff] }
0x155c   :  { %2457 = vmatprep.mubr.msk.f32.mxu1 %vm141_vm3, %v1026_v7 }
0x15c4   :  { %v1014_v58 = vpop.permute.xlu0 %1013 }
0x15c5   :  { %1016 = vst.msk [vmem:[#allocation2 + $0x8] sm:$0xc0] %vm577_vm5, %v1014_v58 }
0x15cc   :  { %v1027_v59 = vld [vmem:[#allocation2 + $0x8] sm:$0xff] }
0x15cd   :  { %2458 = vmatmul.mubr.msk.f32.vlgmr.msra.gmra.mxu1 %vm141_vm3, %v1027_v59 }
0x15ce   :  { %2472 = vmatpush3.msra.mxu1 %v3009_v51  ;;  %2479 = vmatprep.mubr.msk.f32.mxu1 %vm2804_vm0, %v2803_v0 }
0x15cf   :  { %2473 = vmatprep.subr.mxu1 %v2803_v0 }
0x15d0   :  { %2474 = vmatpush3.msra.mxu1 %v3012_v52 }
0x15d1   :  { %2475 = vmatprep.subr.mxu1 %v2803_v0 }
0x15d2   :  { %2476 = vmatpush3.msra.mxu1 %v3015_v2 }
0x15d3   :  { %2477 = vmatprep.subr.mxu1 %v2803_v0 }
0x15d4   :  { %2478 = vmatpush3.msra.mxu1 %v3021_v54 }
0x15d5   :  { %2493 = vmatprep.subr.mxu1 %v2803_v0 }
0x168d   :  { %v2459_v62 = vpop.f32.mrf.mxu1 }
0x168e   :  { %v3053_v63 = vadd.f32 %v2459_v62, %v2244_v61 }
0x168f   :  { %v1104_v1 = vpop.f32.mrf.mxu1 }
0x1690   :  { %v3055_v3 = vadd.f32 %v2244_v61, %v1104_v1 }
0x1692   :  { %v1183_v5 = vadd.f32 %v1179_v8, %v3055_v3 }
0x1694   :  { %2625 = vtanh.f32 %v1183_v5  ;;  %v2247_v10 = vmul.f32 -1.442695, %v1183_v5 }
0x1696   :  { %2627 = vpow2.f32 %v2247_v10 }
0x16a1   :  { %v2626_v6 = vpop.eup %2625 }
0x16a2   :  { %1193 = vrot.lane.b32.xlu1 %v2626_v6, %s2805_s0 }
0x16a3   :  { %v2628_v12 = vpop.eup %2627 }
0x16a4   :  { %v1187_v14 = vadd.f32 1.0, %v2628_v12 }
0x16a6   :  { %2629 = vrcp.f32 %v1187_v14 }
0x16b3   :  { %v2630_v15 = vpop.eup %2629 }
0x16b4   :  { %v1191_v18 = vmul.f32 0.0, %v2630_v15 }
0x1714   :  { %v1194_v16 = vpop.permute.xlu1 %1193 }
0x1715   :  { %v1196_v17 = vmul.f32 %v2630_v15, %v1194_v16 }
0x1717   :  { %1198 = vrot.lane.b32.xlu0 %v1196_v17, %s2806_s1 }
0x1789   :  { %v1199_v19 = vpop.permute.xlu0 %1198 }
0x178a   :  { %v1201_v20 = vadd.f32 %v1199_v19, %v1191_v18 }
0x178c   :  { %2631 = vtanh.f32 %v1201_v20  ;;  %v1297_v36 = vrot.slane %v1201_v20, 6 }
0x1799   :  { %v2632_v21 = vpop.eup %2631 }
0x179a   :  { %1204 = vrot.lane.b32.xlu1 %v2632_v21, %s2805_s0 }
0x180c   :  { %v1205_v22 = vpop.permute.xlu1 %1204 }
0x180d   :  { %v1207_v23 = vmul.f32 %v2630_v15, %v1205_v22 }
0x180f   :  { %1209 = vrot.lane.b32.xlu0 %v1207_v23, %s2806_s1 }
0x1881   :  { %v1210_v24 = vpop.permute.xlu0 %1209 }
0x1882   :  { %1212 = vst.msk [vmem:[#allocation2] sm:$0x3] %vm244_vm2, %v1210_v24  ;;  %2480 = vmatmul.mubr.msk.f32.vlgmr.msra.gmra.mxu1 %vm141_vm3, %v1210_v24 }
0x1883   :  { %2494 = vmatpush3.msra.mxu1 %v3009_v51  ;;  %2501 = vmatprep.mubr.msk.f32.mxu1 %vm2804_vm0, %v2803_v0 }
0x1884   :  { %2495 = vmatprep.subr.mxu1 %v2803_v0 }
0x1885   :  { %2496 = vmatpush3.msra.mxu1 %v3012_v52 }
0x1886   :  { %2497 = vmatprep.subr.mxu1 %v2803_v0 }
0x1887   :  { %2498 = vmatpush3.msra.mxu1 %v3015_v2 }
0x1888   :  { %2499 = vmatprep.subr.mxu1 %v2803_v0 }
0x1889   :  { %2500 = vmatpush3.msra.mxu1 %v3021_v54 }
0x188a   :  { %2515 = vmatprep.subr.mxu1 %v2803_v0 }
0x1942   :  { %v1281_v25 = vpop.f32.mrf.mxu1 }
0x1943   :  { %v1286_v26 = vrot.slane %v1281_v25, 6 }
0x1944   :  { %v2481_v27 = vpop.f32.mrf.mxu1 }
0x1945   :  { %v1288_v28 = vadd.f32 %v1286_v26, %v3055_v3 }
0x1947   :  { %2633 = vtanh.f32 %v1288_v28  ;;  %v2249_v29 = vmul.f32 -1.442695, %v1288_v28 }
0x1949   :  { %2635 = vpow2.f32 %v2249_v29 }
0x1954   :  { %v2634_v13 = vpop.eup %2633 }
0x1955   :  { %1301 = vrot.lane.b32.xlu1 %v2634_v13, %s2805_s0 }
0x1956   :  { %v2636_v31 = vpop.eup %2635 }
0x1957   :  { %v1292_v32 = vadd.f32 1.0, %v2636_v31 }
0x1959   :  { %2637 = vrcp.f32 %v1292_v32 }
0x1966   :  { %v2638_v33 = vpop.eup %2637 }
0x1967   :  { %v1299_v37 = vmul.f32 %v2638_v33, %v1297_v36 }
0x19c7   :  { %v1302_v34 = vpop.permute.xlu1 %1301 }
0x19c8   :  { %v1304_v35 = vmul.f32 %v2638_v33, %v1302_v34 }
0x19ca   :  { %1306 = vrot.lane.b32.xlu0 %v1304_v35, %s2806_s1 }
0x1a3c   :  { %v1307_v38 = vpop.permute.xlu0 %1306 }
0x1a3d   :  { %v1309_v39 = vadd.f32 %v1307_v38, %v1299_v37 }
0x1a3f   :  { %2639 = vtanh.f32 %v1309_v39  ;;  %v1408_v4 = vrot.slane %v1309_v39, 6 }
0x1a4c   :  { %v2640_v40 = vpop.eup %2639 }
0x1a4d   :  { %1312 = vrot.lane.b32.xlu1 %v2640_v40, %s2805_s0 }
0x1abf   :  { %v1313_v41 = vpop.permute.xlu1 %1312 }
0x1ac0   :  { %v3078_v42 = vmul.f32 %v2638_v33, %v1313_v41 }
0x1ac2   :  { %v1321_v11 = vrot.slane %v3078_v42, 2 }
0x1ac4   :  { %1322 = vrot.lane.b32.xlu0 %v1321_v11, %s2806_s1 }
0x1b36   :  { %v1323_v43 = vpop.permute.xlu0 %1322 }
0x1b37   :  { %2491 = vmatmul.mubr.msk.f32.vlgmr.msra.gmra.mxu0 %vm141_vm3, %v1323_v43 }
0x1b38   :  { %2505 = vmatpush3.msra.mxu0 %v3009_v51  ;;  %2512 = vmatprep.mubr.msk.f32.mxu0 %vm2804_vm0, %v2803_v0 }
0x1b39   :  { %2506 = vmatprep.subr.mxu0 %v2803_v0 }
0x1b3a   :  { %2507 = vmatpush3.msra.mxu0 %v3012_v52 }
0x1b3b   :  { %2508 = vmatprep.subr.mxu0 %v2803_v0 }
0x1b3c   :  { %2509 = vmatpush3.msra.mxu0 %v3015_v2 }
0x1b3d   :  { %2510 = vmatprep.subr.mxu0 %v2803_v0 }
0x1b3e   :  { %2511 = vmatpush3.msra.mxu0 %v3021_v54 }
0x1b3f   :  { %2526 = vmatprep.subr.mxu0 %v2803_v0 }
0x1bf7   :  { %v1392_v44 = vpop.f32.mrf.mxu0 }
0x1bf8   :  { %v1397_v45 = vrot.slane %v1392_v44, 4 }
0x1bf9   :  { %v2492_v46 = vpop.f32.mrf.mxu0 }
0x1bfa   :  { %v1399_v47 = vadd.f32 %v1397_v45, %v3055_v3 }
0x1bfc   :  { %2641 = vtanh.f32 %v1399_v47  ;;  %v2251_v30 = vmul.f32 -1.442695, %v1399_v47 }
0x1bfe   :  { %2643 = vpow2.f32 %v2251_v30 }
0x1c09   :  { %v2642_v48 = vpop.eup %2641 }
0x1c0a   :  { %1412 = vrot.lane.b32.xlu1 %v2642_v48, %s2805_s0 }
0x1c0b   :  { %v2644_v49 = vpop.eup %2643 }
0x1c0c   :  { %v1403_v50 = vadd.f32 1.0, %v2644_v49 }
0x1c0e   :  { %2645 = vrcp.f32 %v1403_v50 }
0x1c1b   :  { %v2646_v53 = vpop.eup %2645 }
0x1c1c   :  { %v1410_v56 = vmul.f32 %v2646_v53, %v1408_v4 }
0x1c7c   :  { %v1413_v9 = vpop.permute.xlu1 %1412 }
0x1c7d   :  { %v1415_v55 = vmul.f32 %v2646_v53, %v1413_v9 }
0x1c7f   :  { %1417 = vrot.lane.b32.xlu0 %v1415_v55, %s2806_s1 }
0x1cf1   :  { %v1418_v57 = vpop.permute.xlu0 %1417 }
0x1cf2   :  { %v1420_v7 = vadd.f32 %v1418_v57, %v1410_v56 }
0x1cf4   :  { %2647 = vtanh.f32 %v1420_v7  ;;  %v1519_v19 = vrot.slane %v1420_v7, 6 }
0x1d01   :  { %v2648_v58 = vpop.eup %2647 }
0x1d02   :  { %1423 = vrot.lane.b32.xlu1 %v2648_v58, %s2805_s0 }
0x1d74   :  { %v1424_v59 = vpop.permute.xlu1 %1423 }
0x1d75   :  { %v3097_v8 = vmul.f32 %v2646_v53, %v1424_v59 }
0x1d77   :  { %v1432_v60 = vrot.slane %v3097_v8, 4 }
0x1d79   :  { %1433 = vrot.lane.b32.xlu0 %v1432_v60, %s2806_s1 }
0x1deb   :  { %v1434_v61 = vpop.permute.xlu0 %1433 }
0x1dec   :  { %2502 = vmatmul.mubr.msk.f32.vlgmr.msra.gmra.mxu1 %vm141_vm3, %v1434_v61 }
0x1ded   :  { %2516 = vmatpush3.msra.mxu1 %v3009_v51  ;;  %2523 = vmatprep.mubr.msk.f32.mxu1 %vm2804_vm0, %v2803_v0 }
0x1dee   :  { %2517 = vmatprep.subr.mxu1 %v2803_v0 }
0x1def   :  { %2518 = vmatpush3.msra.mxu1 %v3012_v52 }
0x1df0   :  { %2519 = vmatprep.subr.mxu1 %v2803_v0 }
0x1df1   :  { %2520 = vmatpush3.msra.mxu1 %v3015_v2 }
0x1df2   :  { %2521 = vmatprep.subr.mxu1 %v2803_v0 }
0x1df3   :  { %2522 = vmatpush3.msra.mxu1 %v3021_v54 }
0x1df4   :  { %2537 = vmatprep.subr.mxu1 %v2803_v0 }
0x1eac   :  { %v1503_v62 = vpop.f32.mrf.mxu1 }
0x1ead   :  { %v1508_v1 = vrot.slane %v1503_v62, 2 }
0x1eae   :  { %v2503_v5 = vpop.f32.mrf.mxu1 }
0x1eaf   :  { %v1510_v6 = vadd.f32 %v1508_v1, %v3055_v3 }
0x1eb1   :  { %2649 = vtanh.f32 %v1510_v6  ;;  %v2253_v12 = vmul.f32 -1.442695, %v1510_v6 }
0x1eb3   :  { %2651 = vpow2.f32 %v2253_v12 }
0x1ebe   :  { %v2650_v10 = vpop.eup %2649 }
0x1ebf   :  { %1523 = vrot.lane.b32.xlu1 %v2650_v10, %s2805_s0 }
0x1ec0   :  { %v2652_v14 = vpop.eup %2651 }
0x1ec1   :  { %v1514_v15 = vadd.f32 1.0, %v2652_v14 }
0x1ec3   :  { %2653 = vrcp.f32 %v1514_v15 }
0x1ed0   :  { %v2654_v16 = vpop.eup %2653 }
0x1ed1   :  { %v1521_v20 = vmul.f32 %v2654_v16, %v1519_v19 }
0x1f31   :  { %v1524_v17 = vpop.permute.xlu1 %1523 }
0x1f32   :  { %v1526_v18 = vmul.f32 %v2654_v16, %v1524_v17 }
0x1f34   :  { %1528 = vrot.lane.b32.xlu0 %v1526_v18, %s2806_s1 }
0x1fa6   :  { %v1529_v21 = vpop.permute.xlu0 %1528 }
0x1fa7   :  { %v1531_v22 = vadd.f32 %v1529_v21, %v1521_v20 }
0x1fa9   :  { %2655 = vtanh.f32 %v1531_v22  ;;  %v1627_v37 = vrot.slane %v1531_v22, 6 }
0x1fb6   :  { %v2656_v3 = vpop.eup %2655 }
0x1fb7   :  { %1534 = vrot.lane.b32.xlu1 %v2656_v3, %s2805_s0 }
0x2029   :  { %v1535_v23 = vpop.permute.xlu1 %1534 }
0x202a   :  { %v3116_v24 = vmul.f32 %v2654_v16, %v1535_v23 }
0x202c   :  { %v1543_v25 = vrot.slane %v3116_v24, 6 }
0x202e   :  { %1544 = vrot.lane.b32.xlu0 %v1543_v25, %s2806_s1 }
0x20a0   :  { %v1545_v26 = vpop.permute.xlu0 %1544 }
0x20a1   :  { %2513 = vmatmul.mubr.msk.f32.vlgmr.msra.gmra.mxu0 %vm141_vm3, %v1545_v26 }
0x20a2   :  { %2527 = vmatpush3.msra.mxu0 %v3009_v51  ;;  %2534 = vmatprep.mubr.msk.f32.mxu0 %vm2804_vm0, %v2803_v0 }
0x20a3   :  { %2528 = vmatprep.subr.mxu0 %v2803_v0 }
0x20a4   :  { %2529 = vmatpush3.msra.mxu0 %v3012_v52 }
0x20a5   :  { %2530 = vmatprep.subr.mxu0 %v2803_v0 }
0x20a6   :  { %2531 = vmatpush3.msra.mxu0 %v3015_v2 }
0x20a7   :  { %2532 = vmatprep.subr.mxu0 %v2803_v0 }
0x20a8   :  { %2533 = vmatpush3.msra.mxu0 %v3021_v54 }
0x2161   :  { %v1614_v27 = vpop.f32.mrf.mxu0 }
0x2162   :  { %v1618_v28 = vadd.f32 %v1614_v27, %v3053_v63 }
0x2163   :  { %v2514_v13 = vpop.f32.mrf.mxu0 }
0x2164   :  { %2657 = vtanh.f32 %v1618_v28  ;;  %v2255_v31 = vmul.f32 -1.442695, %v1618_v28 }
0x2166   :  { %2659 = vpow2.f32 %v2255_v31 }
0x2171   :  { %v2658_v29 = vpop.eup %2657 }
0x2172   :  { %1631 = vrot.lane.b32.xlu1 %v2658_v29, %s2805_s0 }
0x2173   :  { %v2660_v32 = vpop.eup %2659 }
0x2174   :  { %v1622_v33 = vadd.f32 1.0, %v2660_v32 }
0x2176   :  { %2661 = vrcp.f32 %v1622_v33 }
0x2183   :  { %v2662_v34 = vpop.eup %2661 }
0x2184   :  { %v1629_v38 = vmul.f32 %v2662_v34, %v1627_v37 }
0x21e4   :  { %v1632_v35 = vpop.permute.xlu1 %1631 }
0x21e5   :  { %v1634_v36 = vmul.f32 %v2662_v34, %v1632_v35 }
0x21e7   :  { %1636 = vrot.lane.b32.xlu0 %v1634_v36, %s2806_s1 }
0x2259   :  { %v1637_v39 = vpop.permute.xlu0 %1636 }
0x225a   :  { %v1639_v40 = vadd.f32 %v1637_v39, %v1629_v38 }
0x225c   :  { %2663 = vtanh.f32 %v1639_v40 }
0x2269   :  { %v2664_v41 = vpop.eup %2663 }
0x226a   :  { %1642 = vrot.lane.b32.xlu1 %v2664_v41, %s2805_s0 }
0x22dc   :  { %v1643_v11 = vpop.permute.xlu1 %1642 }
0x22dd   :  { %v1645_v43 = vmul.f32 %v2662_v34, %v1643_v11 }
0x22df   :  { %1647 = vrot.lane.b32.xlu0 %v1645_v43, %s2806_s1 }
0x2351   :  { %v1648_v44 = vpop.permute.xlu0 %1647 }
0x2352   :  { %1650 = vst.msk [vmem:[#allocation2 + $0x8] sm:$0x3] %vm244_vm2, %v1648_v44  ;;  %2524 = vmatmul.mubr.msk.f32.vlgmr.msra.gmra.mxu1 %vm141_vm3, %v1648_v44 }
0x2353   :  { %2538 = vmatpush3.msra.mxu1 %v3009_v51  ;;  %2545 = vmatprep.mubr.msk.f32.mxu1 %vm2804_vm0, %v2803_v0 }
0x2354   :  { %2539 = vmatprep.subr.mxu1 %v2803_v0 }
0x2355   :  { %2540 = vmatpush3.msra.mxu1 %v3012_v52 }
0x2356   :  { %2541 = vmatprep.subr.mxu1 %v2803_v0 }
0x2357   :  { %2542 = vmatpush3.msra.mxu1 %v3015_v2 }
0x2358   :  { %2543 = vmatprep.subr.mxu1 %v2803_v0  ;;  %v1735_v0 = vrot.slane %v1639_v40, 6 }
0x2359   :  { %2544 = vmatpush3.msra.mxu1 %v3021_v54 }
0x2412   :  { %v1719_v45 = vpop.f32.mrf.mxu1 }
0x2413   :  { %v1724_v46 = vrot.slane %v1719_v45, 6 }
0x2414   :  { %v2525_v47 = vpop.f32.mrf.mxu1 }
0x2415   :  { %v1726_v51 = vadd.f32 %v1724_v46, %v3053_v63 }
0x2417   :  { %2665 = vtanh.f32 %v1726_v51  ;;  %v2257_v30 = vmul.f32 -1.442695, %v1726_v51 }
0x2419   :  { %2667 = vpow2.f32 %v2257_v30 }
0x2424   :  { %v2666_v48 = vpop.eup %2665 }
0x2425   :  { %1739 = vrot.lane.b32.xlu1 %v2666_v48, %s2805_s0 }
0x2426   :  { %v2668_v52 = vpop.eup %2667 }
0x2427   :  { %v1730_v49 = vadd.f32 1.0, %v2668_v52 }
0x2429   :  { %2669 = vrcp.f32 %v1730_v49 }
0x2436   :  { %v2670_v50 = vpop.eup %2669 }
0x2437   :  { %v1737_v54 = vmul.f32 %v2670_v50, %v1735_v0 }
0x2497   :  { %v1740_v2 = vpop.permute.xlu1 %1739 }
0x2498   :  { %v1742_v53 = vmul.f32 %v2670_v50, %v1740_v2 }
0x249a   :  { %1744 = vrot.lane.b32.xlu0 %v1742_v53, %s2806_s1 }
0x250c   :  { %v1745_v9 = vpop.permute.xlu0 %1744 }
0x250d   :  { %v1747_v55 = vadd.f32 %v1745_v9, %v1737_v54 }
0x250f   :  { %2671 = vtanh.f32 %v1747_v55  ;;  %v1846_v16 = vrot.slane %v1747_v55, 6 }
0x251c   :  { %v2672_v4 = vpop.eup %2671 }
0x251d   :  { %1750 = vrot.lane.b32.xlu1 %v2672_v4, %s2805_s0 }
0x258f   :  { %v1751_v56 = vpop.permute.xlu1 %1750 }
0x2590   :  { %v3150_v57 = vmul.f32 %v2670_v50, %v1751_v56 }
0x2592   :  { %v1759_v7 = vrot.slane %v3150_v57, 2 }
0x2594   :  { %1760 = vrot.lane.b32.xlu0 %v1759_v7, %s2806_s1 }
0x2606   :  { %v1761_v58 = vpop.permute.xlu0 %1760 }
0x2607   :  { %2535 = vmatmul.mubr.msk.f32.vlgmr.msra.gmra.mxu0 %vm141_vm3, %v1761_v58 }
0x26c7   :  { %v1830_v59 = vpop.f32.mrf.mxu0 }
0x26c8   :  { %v1835_v60 = vrot.slane %v1830_v59, 4 }
0x26c9   :  { %v2536_v61 = vpop.f32.mrf.mxu0 }
0x26ca   :  { %v1837_v62 = vadd.f32 %v1835_v60, %v3053_v63 }
0x26cc   :  { %2673 = vtanh.f32 %v1837_v62  ;;  %v2259_v5 = vmul.f32 -1.442695, %v1837_v62 }
0x26ce   :  { %2675 = vpow2.f32 %v2259_v5 }
0x26d9   :  { %v2674_v1 = vpop.eup %2673 }
0x26da   :  { %1850 = vrot.lane.b32.xlu1 %v2674_v1, %s2805_s0 }
0x26db   :  { %v2676_v6 = vpop.eup %2675 }
0x26dc   :  { %v1841_v10 = vadd.f32 1.0, %v2676_v6 }
0x26de   :  { %2677 = vrcp.f32 %v1841_v10 }
0x26eb   :  { %v2678_v12 = vpop.eup %2677 }
0x26ec   :  { %v1848_v17 = vmul.f32 %v2678_v12, %v1846_v16 }
0x274c   :  { %v1851_v14 = vpop.permute.xlu1 %1850 }
0x274d   :  { %v1853_v15 = vmul.f32 %v2678_v12, %v1851_v14 }
0x274f   :  { %1855 = vrot.lane.b32.xlu0 %v1853_v15, %s2806_s1 }
0x27c1   :  { %v1856_v18 = vpop.permute.xlu0 %1855 }
0x27c2   :  { %v1858_v19 = vadd.f32 %v1856_v18, %v1848_v17 }
0x27c4   :  { %2679 = vtanh.f32 %v1858_v19 }
0x27d1   :  { %v2680_v20 = vpop.eup %2679 }
0x27d2   :  { %1861 = vrot.lane.b32.xlu1 %v2680_v20, %s2805_s0 }
0x2844   :  { %v1862_v21 = vpop.permute.xlu1 %1861 }
0x2845   :  { %v1864_v22 = vmul.f32 %v2678_v12, %v1862_v21 }
0x2847   :  { %v1870_v3 = vrot.slane %v1864_v22, 4 }
0x2849   :  { %1871 = vrot.lane.b32.xlu0 %v1870_v3, %s2806_s1 }
0x28bb   :  { %v1872_v23 = vpop.permute.xlu0 %1871 }
0x28bc   :  { %2546 = vmatmul.mubr.msk.f32.vlgmr.msra.gmra.mxu1 %vm141_vm3, %v1872_v23 }
0x297c   :  { %v1941_v25 = vpop.f32.mrf.mxu1 }
0x297d   :  { %v1946_v26 = vrot.slane %v1941_v25, 2 }
0x297e   :  { %v2547_v27 = vpop.f32.mrf.mxu1 }
0x297f   :  { %v1948_v28 = vadd.f32 %v1946_v26, %v3053_v63  ;;  %v1957_v63 = vrot.slane %v1858_v19, 6 }
0x2981   :  { %2681 = vtanh.f32 %v1948_v28  ;;  %v2261_v29 = vmul.f32 -1.442695, %v1948_v28 }
0x2983   :  { %2683 = vpow2.f32 %v2261_v29 }
0x298e   :  { %v2682_v13 = vpop.eup %2681 }
0x298f   :  { %1961 = vrot.lane.b32.xlu1 %v2682_v13, %s2805_s0 }
0x2990   :  { %v2684_v31 = vpop.eup %2683 }
0x2991   :  { %v1952_v32 = vadd.f32 1.0, %v2684_v31  ;;  %v2807_v31 = vmov 0  }
0x2992   :  { %2559 = vset.pattern.permute.xlu0 %v2807_v31  ;;  %2560 = vset.pattern.permute.xlu1 %v2807_v31 }
0x2993   :  { %2685 = vrcp.f32 %v1952_v32 }
0x29a0   :  { %v2686_v33 = vpop.eup %2685 }
0x29a1   :  { %v1959_v36 = vmul.f32 %v2686_v33, %v1957_v63 }
0x2a01   :  { %v1962_v34 = vpop.permute.xlu1 %1961 }
0x2a02   :  { %v1964_v35 = vmul.f32 %v2686_v33, %v1962_v34 }
0x2a04   :  { %1966 = vrot.lane.b32.xlu0 %v1964_v35, %s2806_s1 }
0x2a08   :  { %1317 = vrot.lane.b32.xlu0 %v3078_v42, %s2806_s1 }
0x2a0c   :  { %1539 = vrot.lane.b32.xlu0 %v3116_v24, %s2806_s1 }
0x2a10   :  { %1866 = vrot.lane.b32.xlu0 %v1864_v22, %s2806_s1 }
0x2a76   :  { %v1967_v37 = vpop.permute.xlu0 %1966 }
0x2a77   :  { %v1969_v38 = vadd.f32 %v1967_v37, %v1959_v36 }
0x2a79   :  { %2687 = vtanh.f32 %v1969_v38 }
0x2a7a   :  { %v1318_v39 = vpop.permute.xlu0 %1317 }
0x2a7b   :  { %1320 = vst.msk [vmem:[#allocation2] sm:$0xc] %vm353_vm4, %v1318_v39 }
0x2a7e   :  { %v1540_v40 = vpop.permute.xlu0 %1539 }
0x2a7f   :  { %1542 = vst.msk [vmem:[#allocation2] sm:$0xc0] %vm577_vm5, %v1540_v40 }
0x2a82   :  { %v1867_v41 = vpop.permute.xlu0 %1866 }
0x2a83   :  { %1869 = vst.msk [vmem:[#allocation2 + $0x8] sm:$0x30] %vm465_vm6, %v1867_v41 }
0x2a86   :  { %v2688_v42 = vpop.eup %2687 }
0x2a87   :  { %1972 = vrot.lane.b32.xlu1 %v2688_v42, %s2805_s0 }
0x2a8b   :  { %1428 = vrot.lane.b32.xlu1 %v3097_v8, %s2806_s1 }
0x2a8f   :  { %1755 = vrot.lane.b32.xlu1 %v3150_v57, %s2806_s1 }
0x2af9   :  { %v1973_v24 = vpop.permute.xlu1 %1972 }
0x2afa   :  { %v1975_v11 = vmul.f32 %v2686_v33, %v1973_v24 }
0x2afc   :  { %1977 = vrot.lane.b32.xlu1 %v1975_v11, %s2806_s1  ;;  %v1991_v43 = vrot.slane %v1975_v11, 4  ;;  %v1999_v45 = vrot.slane %v1975_v11, 2  ;;  %v1983_v46 = vrot.slane %v1975_v11, 6 }
0x2afd   :  { %v1429_v44 = vpop.permute.xlu1 %1428 }
0x2afe   :  { %1431 = vst.msk [vmem:[#allocation2] sm:$0x30] %vm465_vm6, %v1429_v44  ;;  %1992 = vrot.lane.b32.xlu0 %v1991_v43, %s2806_s1 }
0x2b00   :  { %2000 = vrot.lane.b32.xlu1 %v1999_v45, %s2806_s1 }
0x2b01   :  { %v1756_v47 = vpop.permute.xlu1 %1755 }
0x2b02   :  { %1758 = vst.msk [vmem:[#allocation2 + $0x8] sm:$0xc] %vm353_vm4, %v1756_v47  ;;  %1984 = vrot.lane.b32.xlu0 %v1983_v46, %s2806_s1 }
0x2b05   :  { %v3183_v51 = vld [vmem:[#allocation2] sm:$0xff] }
0x2b6e   :  { %v1978_v8 = vpop.permute.xlu1 %1977 }
0x2b6f   :  { %1980 = vst.msk [vmem:[#allocation2 + $0x8] sm:$0xc0] %vm577_vm5, %v1978_v8  ;;  %v2007_v48 = vmul.f32 %v3183_v51, %v1978_v8 }
0x2b70   :  { %v1993_v30 = vpop.permute.xlu0 %1992 }
0x2b71   :  { %v1995_v52 = vmul.f32 %v1993_v30, %v3183_v51  ;;  %v2008_v49 = vsel %vm577_vm5, %v2007_v48, 0.0 }
0x2b72   :  { %v2001_v50 = vpop.permute.xlu1 %2000  ;;  %2009 = vadd.xlane.f32.xlu1 %v2008_v49 }
0x2b73   :  { %v2003_v2 = vmul.f32 %v2001_v50, %v3183_v51  ;;  %v1996_v9 = vsel %vm353_vm4, %v1995_v52, 0.0 }
0x2b74   :  { %v1985_v53 = vpop.permute.xlu0 %1984 }
0x2b75   :  { %v1987_v0 = vmul.f32 %v1985_v53, %v3183_v51  ;;  %v2004_v54 = vsel %vm465_vm6, %v2003_v2, 0.0 }
0x2b76   :  { %v3193_v55 = vld [vmem:[#allocation2 + $0x8] sm:$0xff]  ;;  %2005 = vadd.xlane.f32.xlu0 %v2004_v54  ;;  %1997 = vadd.xlane.f32.xlu1 %v1996_v9 }
0x2b77   :  { %v2011_v4 = vmul.f32 %v1985_v53, %v3193_v55  ;;  %v2015_v56 = vmul.f32 %v1993_v30, %v3193_v55  ;;  %v1988_v7 = vsel %vm244_vm2, %v1987_v0, 0.0  ;;  %v2023_v58 = vmul.f32 %v3193_v55, %v1978_v8 }
0x2b78   :  { %v2019_v59 = vmul.f32 %v2001_v50, %v3193_v55 }
0x2b79   :  { %v2012_v57 = vsel %vm244_vm2, %v2011_v4, 0.0  ;;  %v2024_v60 = vsel %vm577_vm5, %v2023_v58, 0.0  ;;  %v2016_v61 = vsel %vm353_vm4, %v2015_v56, 0.0 }
0x2b7a   :  { %2013 = vadd.xlane.f32.xlu1 %v2012_v57  ;;  %1989 = vadd.xlane.f32.xlu0 %v1988_v7  ;;  %v2020_v62 = vsel %vm465_vm6, %v2019_v59, 0.0 }
0x2b7e   :  { %2025 = vadd.xlane.f32.xlu1 %v2024_v60  ;;  %2017 = vadd.xlane.f32.xlu0 %v2016_v61 }
0x2b82   :  { %2021 = vadd.xlane.f32.xlu0 %v2020_v62 }
0x2bfb   :  { %v2010_v1 = vpop.xlane.xlu1 %2009 }
0x2bfc   :  { %v2034_v18 = vrot.slane %v2010_v1, 6 }
0x2bff   :  { %v2006_v5 = vpop.xlane.xlu0 %2005  ;;  %v1998_v6 = vpop.xlane.xlu1 %1997 }
0x2c00   :  { %v2028_v10 = vrot.slane %v1998_v6, 2  ;;  %v2031_v14 = vrot.slane %v2006_v5, 4 }
0x2c03   :  { %v3204_v12 = vpop.xlane.xlu0 %1989  ;;  %v3206_v15 = vpop.xlane.xlu1 %2013 }
0x2c04   :  { %v2046_v16 = vsel %vm2045_vm7, %v3204_v12, %v2028_v10 }
0x2c05   :  { %v2048_v17 = vsel %vm2047_vm8, %v2046_v16, %v2031_v14 }
0x2c06   :  { %v2050_v20 = vsel %vm2049_vm9, %v2048_v17, %v2034_v18 }
0x2c07   :  { %v2018_v19 = vpop.xlane.xlu0 %2017  ;;  %v2026_v22 = vpop.xlane.xlu1 %2025  ;;  %v2052_v25 = vsel %vm2051_vm10, %v2050_v20, %v3206_v15 }
0x2c08   :  { %v2037_v21 = vrot.slane %v2018_v19, 2  ;;  %v2043_v26 = vrot.slane %v2026_v22, 6 }
0x2c0a   :  { %v2054_v27 = vsel %vm2053_vm11, %v2052_v25, %v2037_v21 }
0x2c0b   :  { %v2022_v3 = vpop.xlane.xlu0 %2021 }
0x2c0c   :  { %v2040_v23 = vrot.slane %v2022_v3, 4 }
0x2c0e   :  { %v2056_v28 = vsel %vm2055_vm12, %v2054_v27, %v2040_v23 }
0x2c0f   :  { %v2058_v13 = vsel %vm2057_vm13, %v2056_v28, %v2043_v26 }
0x2c10   :  { %v2060_v29 = vsel %vm2059_vm14, %v2058_v13, -inf }
0x2c11   :  { %2061 = vmax.xlane.f32.xlu0 %v2060_v29 }
0x2c9a   :  { %v2062_v32 = vpop.xlane.xlu0 %2061 }
0x2c9b   :  { %v2063_v33 = vsub.f32 %v2058_v13, %v2062_v32  ;;  %v2079_v34 = vrot.slane %v2062_v32, 6  ;;  %v2094_v37 = vrot.slane %v2062_v32, 4  ;;  %v2109_v39 = vrot.slane %v2062_v32, 2 }
0x2c9c   :  { %v2073_v53 = vsub.f32 %v3204_v12, %v2062_v32  ;;  %v2124_v54 = vsub.f32 %v3206_v15, %v2062_v32 }
0x2c9d   :  { %v2064_v35 = vmul.f32 1.442695, %v2063_v33  ;;  %v2081_v63 = vsub.f32 %v1998_v6, %v2079_v34  ;;  %v2096_v38 = vsub.f32 %v2006_v5, %v2094_v37  ;;  %v2111_v42 = vsub.f32 %v2010_v1, %v2109_v39 }
0x2c9e   :  { %v2129_v44 = vsub.f32 %v2018_v19, %v2079_v34  ;;  %v2142_v46 = vsub.f32 %v2022_v3, %v2094_v37  ;;  %v2155_v8 = vsub.f32 %v2026_v22, %v2109_v39  ;;  %v2074_v0 = vmul.f32 1.442695, %v2073_v53 }
0x2c9f   :  { %2689 = vpow2.f32 %v2064_v35  ;;  %v2082_v36 = vmul.f32 1.442695, %v2081_v63  ;;  %v2097_v41 = vmul.f32 1.442695, %v2096_v38  ;;  %v2112_v43 = vmul.f32 1.442695, %v2111_v42 }
0x2ca0   :  { %v2130_v45 = vmul.f32 1.442695, %v2129_v44  ;;  %v2143_v47 = vmul.f32 1.442695, %v2142_v46  ;;  %v2156_v48 = vmul.f32 1.442695, %v2155_v8 }
0x2ca1   :  { %2691 = vpow2.f32 %v2082_v36  ;;  %v2125_v9 = vmul.f32 1.442695, %v2124_v54 }
0x2ca2   :  { %2693 = vpow2.f32 %v2097_v41 }
0x2ca3   :  { %2695 = vpow2.f32 %v2112_v43 }
0x2ca4   :  { %2697 = vpow2.f32 %v2130_v45 }
0x2ca5   :  { %2699 = vpow2.f32 %v2143_v47 }
0x2ca6   :  { %2701 = vpow2.f32 %v2156_v48 }
0x2ca7   :  { %2703 = vpow2.f32 %v2074_v0 }
0x2ca8   :  { %2705 = vpow2.f32 %v2125_v9 }
0x2cac   :  { %v2690_v40 = vpop.eup %2689 }
0x2cad   :  { %v2066_v24 = vsel %vm2059_vm14, %v2690_v40, 0.0 }
0x2cae   :  { %v2692_v11 = vpop.eup %2691  ;;  %2067 = vadd.xlane.f32.xlu1 %v2066_v24 }
0x2caf   :  { %2086 = vperm.xlu0 %2559, %v2692_v11   ;;  %v2694_v30 = vpop.eup %2693 }
0x2cb0   :  { %v2696_v52 = vpop.eup %2695 }
0x2cb1   :  { %v2698_v49 = vpop.eup %2697 }
0x2cb2   :  { %v2700_v50 = vpop.eup %2699 }
0x2cb3   :  { %v2702_v2 = vpop.eup %2701 }
0x2cb4   :  { %v2704_v7 = vpop.eup %2703 }
0x2cb5   :  { %v2076_v61 = vmul.f32 %v2704_v7, %v3183_v51  ;;  %v2706_v14 = vpop.eup %2705 }
0x2cb6   :  { %v2127_v19 = vmul.f32 %v2706_v14, %v3193_v55 }
0x2cbf   :  { %2101 = vperm.xlu1 %2560, %v2694_v30  }
0x2cc3   :  { %2116 = vperm.xlu1 %2560, %v2696_v52  }
0x2cc7   :  { %2134 = vperm.xlu1 %2560, %v2698_v49  }
0x2ccb   :  { %2147 = vperm.xlu1 %2560, %v2700_v50  }
0x2ccf   :  { %2160 = vperm.xlu1 %2560, %v2702_v2  }
0x2d2a   :  { %v2087_v4 = vpop.permute.xlu0 %2086 }
0x2d2b   :  { %v2089_v57 = vmul.f32 %v2087_v4, %v3183_v51 }
0x2d2d   :  { %v2091_v59 = vrot.slane %v2089_v57, 2 }
0x2d2f   :  { %v2093_v5 = vadd.f32 %v2091_v59, %v2076_v61 }
0x2d37   :  { %v2068_v56 = vpop.xlane.xlu1 %2067 }
0x2d38   :  { %2707 = vrcp.f32 %v2068_v56 }
0x2d3b   :  { %v2102_v58 = vpop.permute.xlu1 %2101 }
0x2d3c   :  { %v2104_v60 = vmul.f32 %v2102_v58, %v3183_v51 }
0x2d3e   :  { %v2106_v62 = vrot.slane %v2104_v60, 4 }
0x2d3f   :  { %v2117_v1 = vpop.permute.xlu1 %2116 }
0x2d40   :  { %v2119_v6 = vmul.f32 %v2117_v1, %v3183_v51  ;;  %v2108_v10 = vadd.f32 %v2106_v62, %v2093_v5 }
0x2d42   :  { %v2121_v12 = vrot.slane %v2119_v6, 6 }
0x2d43   :  { %v2135_v15 = vpop.permute.xlu1 %2134 }
0x2d44   :  { %v2123_v16 = vadd.f32 %v2121_v12, %v2108_v10  ;;  %v2137_v17 = vmul.f32 %v2135_v15, %v3193_v55 }
0x2d45   :  { %v2708_v18 = vpop.eup %2707 }
0x2d46   :  { %v2071_v20 = vmul.f32 %v2708_v18, %v2690_v40  ;;  %v2128_v22 = vadd.f32 %v2127_v19, %v2123_v16  ;;  %v2139_v3 = vrot.slane %v2137_v17, 2 }
0x2d47   :  { %v2148_v21 = vpop.permute.xlu1 %2147 }
0x2d48   :  { %v2150_v23 = vmul.f32 %v2148_v21, %v3193_v55  ;;  %2072 = vst.msk [vmem:[#allocation9] sm:$0x3] %vm2059_vm14, %v2071_v20  ;;  %v2141_v26 = vadd.f32 %v2139_v3, %v2128_v22 }
0x2d4a   :  { %v2152_v25 = vrot.slane %v2150_v23, 4 }
0x2d4b   :  { %v2161_v51 = vpop.permute.xlu1 %2160 }
0x2d4c   :  { %v2163_v27 = vmul.f32 %v2161_v51, %v3193_v55  ;;  %v2154_v28 = vadd.f32 %v2152_v25, %v2141_v26 }
0x2d4e   :  { %v2165_v13 = vrot.slane %v2163_v27, 6 }
0x2d50   :  { %v2167_v29 = vadd.f32 %v2165_v13, %v2154_v28 }
0x2d52   :  { %v2168_v31 = vmul.f32 %v2708_v18, %v2167_v29 }
0x2d54   :  { %v2171_v32 = vsel %vm244_vm2, %v2168_v31, 0.0 }
0x2d55   :  { %2172 = vadd.xlane.f32.xlu1 %v2171_v32 }
0x2dde   :  { %v2173_v33 = vpop.xlane.xlu1 %2172 }
0x2ddf   :  { %v2175_v34 = vmul.f32 0.03125, %v2173_v33 }
0x2de1   :  { %v2176_v35 = vsub.f32 %v2168_v31, %v2175_v34 }
0x2de3   :  { %v2177_v63 = vmul.f32 %v2176_v35, %v2176_v35 }
0x2de5   :  { %v2178_v36 = vsel %vm244_vm2, %v2177_v63, 0.0 }
0x2de6   :  { %2179 = vadd.xlane.f32.xlu0 %v2178_v36 }
0x2de7   :  { %2762 = shalt.err (!%p2759_p0)
}
0x2de8   :  { %2215 = dma.vmem_to_hbm [thread:$0]  %s2213_s28, 32, %s3242_s4, [#allocation10]   ;;  %v2262_v40 = vld [vmem:[%s3240_s2] ss:$0 sm:$0xff]  ;;  %v2263_v42 = vld [vmem:[%s3240_s2 + $0x1] ss:$0 sm:$0xff] }
0x2de9   :  { %s2809_s10 = smov [#allocation8]  }
0x2dea   :  { %s2202_s11 = sshll.u32 %s2809_s10, 4  ;;  %s2203_s11 = int_to_ptr.vmem [resolvable:$true] %s2202_s11 }
0x2deb   :  { %s2771_s4 = scalar_lea.vmem %s2203_s11, 32  ;;  %p2776_p2 = scmp.lt.s32.totalorder %s2203_s11, %s2203_s11 }
0x2dec   :  { %p2772_p1 = scmp.ne.s32.totalorder %s2203_s11, %s2771_s4  ;;  %p2777_p3 = scmp.lt.s32.totalorder %s2771_s4, %s2771_s4 }
0x2dee   :  { %p2778_p4 = por %p2777_p3, %p2776_p2 }
0x2df0   :  { %p2779_p5 = pnand %p2778_p4, %p2772_p1 }
0x2e6f   :  { %v2180_v55 = vpop.xlane.xlu0 %2179 }
0x2e70   :  { %v2181_v37 = vmul.f32 0.03125, %v2180_v55 }
0x2e72   :  { %v2182_v38 = vadd.f32 1e-05, %v2181_v37 }
0x2e74   :  { %2709 = vrsqrt.f32 %v2182_v38 }
0x2e81   :  { %v2710_v39 = vpop.eup %2709 }
0x2e82   :  { %v2184_v41 = vmul.f32 %v2710_v39, %v2176_v35 }
0x2e84   :  { %v2189_v24 = vmul.f32 %v2262_v40, %v2184_v41 }
0x2e86   :  { %v2194_v11 = vadd.f32 %v2263_v42, %v2189_v24 }
0x2e88   :  { %2195 = vst.msk [vmem:[#allocation8] sm:$0x3] %vm244_vm2, %v2194_v11 }
0x2e89   :  { %2782 = shalt.err (!%p2779_p5)
}
0x2e8a   :  { %2205 = dma.vmem_to_hbm [thread:$0]  %s2203_s11, 32, %s3241_s3, [#allocation5]  }
0x2e8b   :  { %2795 = dma.done.wait [#allocation5], 32  }
0x2e8c   :  { %2796 = vsyncadd [#allocation5], 4294967264 }
0x2e8d   :  { %2797 = dma.done.wait [#allocation10], 32  }
0x2e8e   :  { %2798 = vsyncadd [#allocation10], 4294967264 }
0x2e8f   :  { %2222 = vsyncpa [#allocation4], 1 }
0x2e90   :  { %2223 = vsyncpa [#allocation7], 1 }
0x2e91   :  { %2224 = vsyncpa [#allocation5], 1 }
0x2e92   :  { %2225 = vsyncpa [#allocation10], 1 }

</bundles_post_ra>
